<compile_context>
chip_gen: v7x
topology: tpu7x:2x2x1
jax: 0.10.0
libtpu: 0.0.40
codegen_flags: <defaults>
</compile_context>

<pallas_src>
import math

import jax
import jax.numpy as jnp
from jax.experimental import pallas as pl
from jax.experimental.pallas import tpu as pltpu

# ---------------- small synthetic "ViT" config (shapes consistent w/ forward) ------
IMG = 32            # image size
PATCH = 16          # patch size
CH = 3              # input channels
D = 32              # hidden_size
H = 2               # num_attention_heads
DH = D // H         # head dim
DM = 64             # intermediate (MLP) size
L = 2               # num_hidden_layers
NUM_CLASSES = 2
EPS = 1e-12         # HF ViT layer_norm_eps
GRID = IMG // PATCH
NP_ = GRID * GRID   # num patches = 4
S = NP_ + 1         # sequence length incl. CLS = 5
PD = CH * PATCH * PATCH  # flattened patch dim = 768

_GELU_C = math.sqrt(2.0 / math.pi)
_ATTN_SCALE = 1.0 / math.sqrt(DH)


# ---------------- in-kernel helpers ------------------------------------------------
def _layernorm(x, w, b):
    mu = jnp.mean(x, axis=-1, keepdims=True)
    var = jnp.mean((x - mu) ** 2, axis=-1, keepdims=True)
    return (x - mu) * jax.lax.rsqrt(var + EPS) * w + b


def _gelu(x):
    # TODO(synk): HF ViT uses exact (erf) GELU; tanh approximation keeps the
    # activation on the TPU EUP (tanh) path (~1e-3 max difference vs torch).
    return 0.5 * x * (1.0 + jnp.tanh(_GELU_C * (x + 0.044715 * x * x * x)))


# ---------------- single fused Pallas kernel ---------------------------------------
def _vit_fused_kernel(
    patches_ref,                       # (1, NP_, PD)   this image's flattened patches
    cls_tok_ref,                       # (1, D)
    pos_emb_ref,                       # (S, D)
    patch_w_ref, patch_b_ref,          # (PD, D), (1, D)
    ln1_w_ref, ln1_b_ref,              # (L, 1, D)
    wqkv_ref, bqkv_ref,                # (L, D, 3D), (L, 1, 3D)
    wo_ref, bo_ref,                    # (L, D, D), (L, 1, D)
    ln2_w_ref, ln2_b_ref,              # (L, 1, D)
    w1_ref, b1_ref, w2_ref, b2_ref,    # (L, D, DM), (L, 1, DM), (L, DM, D), (L, 1, D)
    fln_w_ref, fln_b_ref,              # (1, D)
    pool_w_ref, pool_b_ref,            # (D, D), (1, D)
    cls_w_ref, cls_b_ref,              # (D, NUM_CLASSES), (1, NUM_CLASSES)
    o_ref,                             # (1, 1, NUM_CLASSES)
    tok_scratch,                       # VMEM (S, D)  token assembly buffer
    ctx_scratch,                       # VMEM (S, D)  per-head attention context
):
    # ---- patch embedding + CLS token + positional embedding (assembled in VMEM) --
    patches = patches_ref[0]                                           # (NP_, PD)
    emb = (
        jnp.dot(patches, patch_w_ref[...], preferred_element_type=jnp.float32)
        + patch_b_ref[...]
    )                                                                  # (NP_, D)
    tok_scratch[0:1, :] = cls_tok_ref[...] + pos_emb_ref[0:1, :]
    tok_scratch[1:S, :] = emb + pos_emb_ref[1:S, :]
    x = tok_scratch[...]                                               # (S, D)

    # ---- L pre-LN transformer blocks; everything resident in VMEM ----------------
    for li in range(L):                                                # static unroll
        # -- multi-head self-attention ------------------------------------------
        h1 = _layernorm(x, ln1_w_ref[li], ln1_b_ref[li])
        qkv = (
            jnp.dot(h1, wqkv_ref[li], preferred_element_type=jnp.float32)
            + bqkv_ref[li]
        )                                                              # (S, 3D)
        q = qkv[:, 0:D]
        k = qkv[:, D:2 * D]
        v = qkv[:, 2 * D:3 * D]
        for h in range(H):                                             # static unroll
            qh = q[:, h * DH:(h + 1) * DH]                             # (S, DH)
            kh = k[:, h * DH:(h + 1) * DH]
            vh = v[:, h * DH:(h + 1) * DH]
            scores = (
                jnp.dot(qh, kh.T, preferred_element_type=jnp.float32) * _ATTN_SCALE
            )                                                          # (S, S)
            scores = scores - jnp.max(scores, axis=-1, keepdims=True)
            p = jnp.exp(scores)
            p = p * pl.reciprocal(
                jnp.sum(p, axis=-1, keepdims=True), approx=True
            )                                                          # softmax
            ctx_scratch[:, h * DH:(h + 1) * DH] = jnp.dot(
                p, vh, preferred_element_type=jnp.float32
            )
        attn_out = (
            jnp.dot(ctx_scratch[...], wo_ref[li], preferred_element_type=jnp.float32)
            + bo_ref[li]
        )
        x = x + attn_out                                               # residual

        # -- pre-LN MLP -----------------------------------------------------------
        h2 = _layernorm(x, ln2_w_ref[li], ln2_b_ref[li])
        mid = _gelu(
            jnp.dot(h2, w1_ref[li], preferred_element_type=jnp.float32) + b1_ref[li]
        )
        mlp_out = (
            jnp.dot(mid, w2_ref[li], preferred_element_type=jnp.float32) + b2_ref[li]
        )
        x = x + mlp_out                                                # residual

    # ---- final LayerNorm -> ViTPooler (dense+tanh on CLS) -> classifier -----------
    cls = _layernorm(x[0:1, :], fln_w_ref[...], fln_b_ref[...])        # (1, D)
    pooled = jnp.tanh(
        jnp.dot(cls, pool_w_ref[...], preferred_element_type=jnp.float32)
        + pool_b_ref[...]
    )
    o_ref[0] = (
        jnp.dot(pooled, cls_w_ref[...], preferred_element_type=jnp.float32)
        + cls_b_ref[...]
    )


# ---------------- glue (reshapes, params, wrapper) ----------------------------------
def extract_patches(pixel_values):
    """NCHW (B, C, H, W) -> (B, num_patches, C*P*P), matching Conv2d(k=P, s=P)."""
    B = pixel_values.shape[0]
    x = pixel_values.reshape(B, CH, GRID, PATCH, GRID, PATCH)
    x = x.transpose(0, 2, 4, 1, 3, 5)            # (B, gh, gw, C, P, P)
    return x.reshape(B, NP_, PD)


def _const_spec(shape):
    nd = len(shape)
    return pl.BlockSpec(shape, lambda b, _nd=nd: (0,) * _nd)


def vit_binary_classifier_forward(pixel_values, params):
    B = pixel_values.shape[0]
    patches = extract_patches(pixel_values)                            # (B, NP_, PD)

    weight_args = [
        params["cls_token"], params["pos_emb"],
        params["patch_w"], params["patch_b"],
        params["ln1_w"], params["ln1_b"],
        params["wqkv"], params["bqkv"],
        params["wo"], params["bo"],
        params["ln2_w"], params["ln2_b"],
        params["w1"], params["b1"], params["w2"], params["b2"],
        params["final_ln_w"], params["final_ln_b"],
        params["pool_w"], params["pool_b"],
        params["cls_w"], params["cls_b"],
    ]
    in_specs = [pl.BlockSpec((1, NP_, PD), lambda b: (b, 0, 0))] + [
        _const_spec(w.shape) for w in weight_args
    ]
    out = pl.pallas_call(
        _vit_fused_kernel,
        out_shape=jax.ShapeDtypeStruct((B, 1, NUM_CLASSES), jnp.float32),
        grid_spec=pltpu.PrefetchScalarGridSpec(
            num_scalar_prefetch=0,
            grid=(B,),                                   # one image per program
            in_specs=in_specs,
            out_specs=pl.BlockSpec((1, 1, NUM_CLASSES), lambda b: (b, 0, 0)),
            scratch_shapes=[
                pltpu.VMEM((S, D), jnp.float32),         # token buffer
                pltpu.VMEM((S, D), jnp.float32),         # attention context
            ],
        ),
        compiler_params=pltpu.CompilerParams(
            dimension_semantics=("parallel",),           # v7x: 1 image per TensorCore
        ),
    )(patches, *weight_args)
    return out.reshape(B, NUM_CLASSES)


def init_params(key):
    def nrm(k, shape):
        return 0.02 * jax.random.normal(k, shape, dtype=jnp.float32)

    keys = jax.random.split(key, 9)
    return {
        "patch_w": nrm(keys[0], (PD, D)),
        "patch_b": jnp.zeros((1, D), jnp.float32),
        "cls_token": nrm(keys[1], (1, D)),
        "pos_emb": nrm(keys[2], (S, D)),
        "final_ln_w": jnp.ones((1, D), jnp.float32),
        "final_ln_b": jnp.zeros((1, D), jnp.float32),
        "pool_w": nrm(keys[3], (D, D)),
        "pool_b": jnp.zeros((1, D), jnp.float32),
        "cls_w": nrm(keys[4], (D, NUM_CLASSES)),
        "cls_b": jnp.zeros((1, NUM_CLASSES), jnp.float32),
        # per-layer weights stacked on a leading L axis; QKV fused into one matmul
        "ln1_w": jnp.ones((L, 1, D), jnp.float32),
        "ln1_b": jnp.zeros((L, 1, D), jnp.float32),
        "wqkv": nrm(keys[5], (L, D, 3 * D)),
        "bqkv": jnp.zeros((L, 1, 3 * D), jnp.float32),
        "wo": nrm(keys[6], (L, D, D)),
        "bo": jnp.zeros((L, 1, D), jnp.float32),
        "ln2_w": jnp.ones((L, 1, D), jnp.float32),
        "ln2_b": jnp.zeros((L, 1, D), jnp.float32),
        "w1": nrm(keys[7], (L, D, DM)),
        "b1": jnp.zeros((L, 1, DM), jnp.float32),
        "w2": nrm(keys[8], (L, DM, D)),
        "b2": jnp.zeros((L, 1, D), jnp.float32),
    }


if __name__ == "__main__":
    key = jax.random.PRNGKey(0)
    k_param, k_input = jax.random.split(key)
    params = init_params(k_param)
    pixel_values = jax.random.normal(k_input, (2, CH, IMG, IMG), dtype=jnp.float32)

    forward = jax.jit(vit_binary_classifier_forward)
    logits = forward(pixel_values, params)
    logits = jax.block_until_ready(logits)
    assert logits.shape == (2, NUM_CLASSES)
    assert bool(jnp.all(jnp.isfinite(logits)))
    print("KERNEL_OK")
</pallas_src>

<mosaic_0001>
module attributes {stable_mosaic.version = 11 : i64} {
  func.func @_vit_fused_kernel(%arg0: i32, %arg1: memref<1x4x768xf32, #tpu.memory_space<vmem>>, %arg2: memref<1x32xf32, #tpu.memory_space<vmem>>, %arg3: memref<5x32xf32, #tpu.memory_space<vmem>>, %arg4: memref<768x32xf32, #tpu.memory_space<vmem>>, %arg5: memref<1x32xf32, #tpu.memory_space<vmem>>, %arg6: memref<2x1x32xf32, #tpu.memory_space<vmem>>, %arg7: memref<2x1x32xf32, #tpu.memory_space<vmem>>, %arg8: memref<2x32x96xf32, #tpu.memory_space<vmem>>, %arg9: memref<2x1x96xf32, #tpu.memory_space<vmem>>, %arg10: memref<2x32x32xf32, #tpu.memory_space<vmem>>, %arg11: memref<2x1x32xf32, #tpu.memory_space<vmem>>, %arg12: memref<2x1x32xf32, #tpu.memory_space<vmem>>, %arg13: memref<2x1x32xf32, #tpu.memory_space<vmem>>, %arg14: memref<2x32x64xf32, #tpu.memory_space<vmem>>, %arg15: memref<2x1x64xf32, #tpu.memory_space<vmem>>, %arg16: memref<2x64x32xf32, #tpu.memory_space<vmem>>, %arg17: memref<2x1x32xf32, #tpu.memory_space<vmem>>, %arg18: memref<1x32xf32, #tpu.memory_space<vmem>>, %arg19: memref<1x32xf32, #tpu.memory_space<vmem>>, %arg20: memref<32x32xf32, #tpu.memory_space<vmem>>, %arg21: memref<1x32xf32, #tpu.memory_space<vmem>>, %arg22: memref<32x2xf32, #tpu.memory_space<vmem>>, %arg23: memref<1x2xf32, #tpu.memory_space<vmem>>, %arg24: memref<1x1x2xf32, #tpu.memory_space<vmem>>, %arg25: memref<5x32xf32, #tpu.memory_space<vmem>>, %arg26: memref<5x32xf32, #tpu.memory_space<vmem>>) attributes {dimension_semantics = [#tpu.dimension_semantics<parallel>], iteration_bounds = array<i64: 2>, scalar_prefetch = 0 : i64, scratch_operands = 2 : i64, tpu.core_type = #tpu.core_type<tc>, window_params = [{transform_indices = @transform_0, window_bounds = array<i64: 1, 4, 768>}, {pipeline_mode = #tpu.pipeline_mode<synchronous>, transform_indices = @transform_1, window_bounds = array<i64: 1, 32>}, {pipeline_mode = #tpu.pipeline_mode<synchronous>, transform_indices = @transform_2, window_bounds = array<i64: 5, 32>}, {pipeline_mode = #tpu.pipeline_mode<synchronous>, transform_indices = @transform_3, window_bounds = array<i64: 768, 32>}, {pipeline_mode = #tpu.pipeline_mode<synchronous>, transform_indices = @transform_4, window_bounds = array<i64: 1, 32>}, {pipeline_mode = #tpu.pipeline_mode<synchronous>, transform_indices = @transform_5, window_bounds = array<i64: 2, 1, 32>}, {pipeline_mode = #tpu.pipeline_mode<synchronous>, transform_indices = @transform_6, window_bounds = array<i64: 2, 1, 32>}, {pipeline_mode = #tpu.pipeline_mode<synchronous>, transform_indices = @transform_7, window_bounds = array<i64: 2, 32, 96>}, {pipeline_mode = #tpu.pipeline_mode<synchronous>, transform_indices = @transform_8, window_bounds = array<i64: 2, 1, 96>}, {pipeline_mode = #tpu.pipeline_mode<synchronous>, transform_indices = @transform_9, window_bounds = array<i64: 2, 32, 32>}, {pipeline_mode = #tpu.pipeline_mode<synchronous>, transform_indices = @transform_10, window_bounds = array<i64: 2, 1, 32>}, {pipeline_mode = #tpu.pipeline_mode<synchronous>, transform_indices = @transform_11, window_bounds = array<i64: 2, 1, 32>}, {pipeline_mode = #tpu.pipeline_mode<synchronous>, transform_indices = @transform_12, window_bounds = array<i64: 2, 1, 32>}, {pipeline_mode = #tpu.pipeline_mode<synchronous>, transform_indices = @transform_13, window_bounds = array<i64: 2, 32, 64>}, {pipeline_mode = #tpu.pipeline_mode<synchronous>, transform_indices = @transform_14, window_bounds = array<i64: 2, 1, 64>}, {pipeline_mode = #tpu.pipeline_mode<synchronous>, transform_indices = @transform_15, window_bounds = array<i64: 2, 64, 32>}, {pipeline_mode = #tpu.pipeline_mode<synchronous>, transform_indices = @transform_16, window_bounds = array<i64: 2, 1, 32>}, {pipeline_mode = #tpu.pipeline_mode<synchronous>, transform_indices = @transform_17, window_bounds = array<i64: 1, 32>}, {pipeline_mode = #tpu.pipeline_mode<synchronous>, transform_indices = @transform_18, window_bounds = array<i64: 1, 32>}, {pipeline_mode = #tpu.pipeline_mode<synchronous>, transform_indices = @transform_19, window_bounds = array<i64: 32, 32>}, {pipeline_mode = #tpu.pipeline_mode<synchronous>, transform_indices = @transform_20, window_bounds = array<i64: 1, 32>}, {pipeline_mode = #tpu.pipeline_mode<synchronous>, transform_indices = @transform_21, window_bounds = array<i64: 32, 2>}, {pipeline_mode = #tpu.pipeline_mode<synchronous>, transform_indices = @transform_22, window_bounds = array<i64: 1, 2>}, {transform_indices = @transform_23, window_bounds = array<i64: 1, 1, 2>}]} {
    %c0 = arith.constant 0 : index
    %c0_0 = arith.constant 0 : index
    %c0_1 = arith.constant 0 : index
    %0 = vector.load %arg1[%c0, %c0_0, %c0_1] : memref<1x4x768xf32, #tpu.memory_space<vmem>>, vector<1x4x768xf32>
    %1 = vector.shape_cast %0 : vector<1x4x768xf32> to vector<4x768xf32>
    %c0_2 = arith.constant 0 : index
    %c0_3 = arith.constant 0 : index
    %2 = vector.load %arg4[%c0_2, %c0_3] : memref<768x32xf32, #tpu.memory_space<vmem>>, vector<768x32xf32>
    %cst = arith.constant dense<0.000000e+00> : vector<4x32xf32>
    %3 = tpu.matmul %1, %2, %cst {dimension_numbers = #tpu.dot_dimension_numbers<[1], [0], [0], [1], [0, 0, 1, 1], [], []>} : vector<4x768xf32>, vector<768x32xf32>, vector<4x32xf32> -> vector<4x32xf32>
    %c0_4 = arith.constant 0 : index
    %c0_5 = arith.constant 0 : index
    %4 = vector.load %arg5[%c0_4, %c0_5] : memref<1x32xf32, #tpu.memory_space<vmem>>, vector<1x32xf32>
    %5 = vector.broadcast %4 : vector<1x32xf32> to vector<4x32xf32>
    %6 = arith.addf %3, %5 : vector<4x32xf32>
    %c0_6 = arith.constant 0 : index
    %c0_7 = arith.constant 0 : index
    %7 = vector.load %arg2[%c0_6, %c0_7] : memref<1x32xf32, #tpu.memory_space<vmem>>, vector<1x32xf32>
    %c0_8 = arith.constant 0 : index
    %c0_9 = arith.constant 0 : index
    %8 = vector.load %arg3[%c0_8, %c0_9] : memref<5x32xf32, #tpu.memory_space<vmem>>, vector<1x32xf32>
    %9 = arith.addf %7, %8 : vector<1x32xf32>
    %c0_10 = arith.constant 0 : index
    %c0_11 = arith.constant 0 : index
    %10 = vector.load %arg25[%c0_10, %c0_11] : memref<5x32xf32, #tpu.memory_space<vmem>>, vector<1x32xf32>
    tpu.vector_store %arg25[%c0_10, %c0_11], %9 {strides = array<i32>} : memref<5x32xf32, #tpu.memory_space<vmem>>, vector<1x32xf32>,
    %c1 = arith.constant 1 : index
    %c0_12 = arith.constant 0 : index
    %11 = vector.load %arg3[%c1, %c0_12] : memref<5x32xf32, #tpu.memory_space<vmem>>, vector<4x32xf32>
    %12 = arith.addf %6, %11 : vector<4x32xf32>
    %c1_13 = arith.constant 1 : index
    %c0_14 = arith.constant 0 : index
    %13 = vector.load %arg25[%c1_13, %c0_14] : memref<5x32xf32, #tpu.memory_space<vmem>>, vector<4x32xf32>
    tpu.vector_store %arg25[%c1_13, %c0_14], %12 {strides = array<i32>} : memref<5x32xf32, #tpu.memory_space<vmem>>, vector<4x32xf32>,
    %c0_15 = arith.constant 0 : index
    %c0_16 = arith.constant 0 : index
    %14 = vector.load %arg25[%c0_15, %c0_16] : memref<5x32xf32, #tpu.memory_space<vmem>>, vector<5x32xf32>
    %c0_17 = arith.constant 0 : index
    %c0_18 = arith.constant 0 : index
    %c0_19 = arith.constant 0 : index
    %15 = vector.load %arg6[%c0_17, %c0_18, %c0_19] : memref<2x1x32xf32, #tpu.memory_space<vmem>>, vector<1x1x32xf32>
    %16 = vector.shape_cast %15 : vector<1x1x32xf32> to vector<1x32xf32>
    %c0_20 = arith.constant 0 : index
    %c0_21 = arith.constant 0 : index
    %c0_22 = arith.constant 0 : index
    %17 = vector.load %arg7[%c0_20, %c0_21, %c0_22] : memref<2x1x32xf32, #tpu.memory_space<vmem>>, vector<1x1x32xf32>
    %18 = vector.shape_cast %17 : vector<1x1x32xf32> to vector<1x32xf32>
    %cst_23 = arith.constant dense<0.000000e+00> : vector<5xf32>
    %19 = vector.multi_reduction <add>, %14, %cst_23 [1] : vector<5x32xf32> to vector<5xf32>
    %20 = vector.shape_cast %19 : vector<5xf32> to vector<5x1xf32>
    %cst_24 = arith.constant 3.200000e+01 : f32
    %21 = vector.broadcast %cst_24 : f32 to vector<5x1xf32>
    %22 = arith.divf %20, %21 : vector<5x1xf32>
    %23 = vector.broadcast %22 : vector<5x1xf32> to vector<5x32xf32>
    %24 = arith.subf %14, %23 : vector<5x32xf32>
    %25 = arith.mulf %24, %24 : vector<5x32xf32>
    %cst_25 = arith.constant dense<0.000000e+00> : vector<5xf32>
    %26 = vector.multi_reduction <add>, %25, %cst_25 [1] : vector<5x32xf32> to vector<5xf32>
    %27 = vector.shape_cast %26 : vector<5xf32> to vector<5x1xf32>
    %cst_26 = arith.constant 3.200000e+01 : f32
    %28 = vector.broadcast %cst_26 : f32 to vector<5x1xf32>
    %29 = arith.divf %27, %28 : vector<5x1xf32>
    %30 = vector.broadcast %22 : vector<5x1xf32> to vector<5x32xf32>
    %31 = arith.subf %14, %30 : vector<5x32xf32>
    %cst_27 = arith.constant 9.99999996E-13 : f32
    %32 = vector.broadcast %cst_27 : f32 to vector<5x1xf32>
    %33 = arith.addf %29, %32 : vector<5x1xf32>
    %34 = math.rsqrt %33 : vector<5x1xf32>
    %35 = vector.broadcast %34 : vector<5x1xf32> to vector<5x32xf32>
    %36 = arith.mulf %31, %35 : vector<5x32xf32>
    %37 = vector.broadcast %16 : vector<1x32xf32> to vector<5x32xf32>
    %38 = arith.mulf %36, %37 : vector<5x32xf32>
    %39 = vector.broadcast %18 : vector<1x32xf32> to vector<5x32xf32>
    %40 = arith.addf %38, %39 : vector<5x32xf32>
    %c0_28 = arith.constant 0 : index
    %c0_29 = arith.constant 0 : index
    %c0_30 = arith.constant 0 : index
    %41 = vector.load %arg8[%c0_28, %c0_29, %c0_30] : memref<2x32x96xf32, #tpu.memory_space<vmem>>, vector<1x32x96xf32>
    %42 = vector.shape_cast %41 : vector<1x32x96xf32> to vector<32x96xf32>
    %cst_31 = arith.constant dense<0.000000e+00> : vector<5x96xf32>
    %43 = tpu.matmul %40, %42, %cst_31 {dimension_numbers = #tpu.dot_dimension_numbers<[1], [0], [0], [1], [0, 0, 1, 1], [], []>} : vector<5x32xf32>, vector<32x96xf32>, vector<5x96xf32> -> vector<5x96xf32>
    %c0_32 = arith.constant 0 : index
    %c0_33 = arith.constant 0 : index
    %c0_34 = arith.constant 0 : index
    %44 = vector.load %arg9[%c0_32, %c0_33, %c0_34] : memref<2x1x96xf32, #tpu.memory_space<vmem>>, vector<1x1x96xf32>
    %45 = vector.shape_cast %44 : vector<1x1x96xf32> to vector<1x96xf32>
    %46 = vector.broadcast %45 : vector<1x96xf32> to vector<5x96xf32>
    %47 = arith.addf %43, %46 : vector<5x96xf32>
    %48 = vector.extract_strided_slice %47 {offsets = [0, 0], sizes = [5, 32], strides = [1, 1]} : vector<5x96xf32> to vector<5x32xf32>
    %49 = vector.extract_strided_slice %47 {offsets = [0, 32], sizes = [5, 32], strides = [1, 1]} : vector<5x96xf32> to vector<5x32xf32>
    %50 = vector.extract_strided_slice %47 {offsets = [0, 64], sizes = [5, 32], strides = [1, 1]} : vector<5x96xf32> to vector<5x32xf32>
    %51 = vector.extract_strided_slice %48 {offsets = [0, 0], sizes = [5, 16], strides = [1, 1]} : vector<5x32xf32> to vector<5x16xf32>
    %52 = vector.extract_strided_slice %49 {offsets = [0, 0], sizes = [5, 16], strides = [1, 1]} : vector<5x32xf32> to vector<5x16xf32>
    %53 = vector.extract_strided_slice %50 {offsets = [0, 0], sizes = [5, 16], strides = [1, 1]} : vector<5x32xf32> to vector<5x16xf32>
    %54 = tpu.transpose %52, [1, 0] : vector<5x16xf32> -> vector<16x5xf32>
    %cst_35 = arith.constant dense<0.000000e+00> : vector<5x5xf32>
    %55 = tpu.matmul %51, %54, %cst_35 {dimension_numbers = #tpu.dot_dimension_numbers<[1], [0], [0], [1], [0, 0, 1, 1], [], []>} : vector<5x16xf32>, vector<16x5xf32>, vector<5x5xf32> -> vector<5x5xf32>
    %cst_36 = arith.constant 2.500000e-01 : f32
    %56 = vector.broadcast %cst_36 : f32 to vector<5x5xf32>
    %57 = arith.mulf %55, %56 : vector<5x5xf32>
    %cst_37 = arith.constant dense<0xFF800000> : vector<5xf32>
    %58 = vector.multi_reduction <maximumf>, %57, %cst_37 [1] : vector<5x5xf32> to vector<5xf32>
    %59 = vector.shape_cast %58 : vector<5xf32> to vector<5x1xf32>
    %60 = vector.broadcast %59 : vector<5x1xf32> to vector<5x5xf32>
    %61 = arith.subf %57, %60 : vector<5x5xf32>
    %62 = math.exp %61 : vector<5x5xf32>
    %cst_38 = arith.constant dense<0.000000e+00> : vector<5xf32>
    %63 = vector.multi_reduction <add>, %62, %cst_38 [1] : vector<5x5xf32> to vector<5xf32>
    %64 = vector.shape_cast %63 : vector<5xf32> to vector<5x1xf32>
    %65 = tpu.reciprocal %64 {approx = true} : vector<5x1xf32> -> vector<5x1xf32>
    %66 = vector.broadcast %65 : vector<5x1xf32> to vector<5x5xf32>
    %67 = arith.mulf %62, %66 : vector<5x5xf32>
    %cst_39 = arith.constant dense<0.000000e+00> : vector<5x16xf32>
    %68 = tpu.matmul %67, %53, %cst_39 {dimension_numbers = #tpu.dot_dimension_numbers<[1], [0], [0], [1], [0, 0, 1, 1], [], []>} : vector<5x5xf32>, vector<5x16xf32>, vector<5x16xf32> -> vector<5x16xf32>
    %c0_40 = arith.constant 0 : index
    %c0_41 = arith.constant 0 : index
    %69 = vector.load %arg26[%c0_40, %c0_41] : memref<5x32xf32, #tpu.memory_space<vmem>>, vector<5x16xf32>
    tpu.vector_store %arg26[%c0_40, %c0_41], %68 {strides = array<i32>} : memref<5x32xf32, #tpu.memory_space<vmem>>, vector<5x16xf32>,
    %70 = vector.extract_strided_slice %48 {offsets = [0, 16], sizes = [5, 16], strides = [1, 1]} : vector<5x32xf32> to vector<5x16xf32>
    %71 = vector.extract_strided_slice %49 {offsets = [0, 16], sizes = [5, 16], strides = [1, 1]} : vector<5x32xf32> to vector<5x16xf32>
    %72 = vector.extract_strided_slice %50 {offsets = [0, 16], sizes = [5, 16], strides = [1, 1]} : vector<5x32xf32> to vector<5x16xf32>
    %73 = tpu.transpose %71, [1, 0] : vector<5x16xf32> -> vector<16x5xf32>
    %cst_42 = arith.constant dense<0.000000e+00> : vector<5x5xf32>
    %74 = tpu.matmul %70, %73, %cst_42 {dimension_numbers = #tpu.dot_dimension_numbers<[1], [0], [0], [1], [0, 0, 1, 1], [], []>} : vector<5x16xf32>, vector<16x5xf32>, vector<5x5xf32> -> vector<5x5xf32>
    %cst_43 = arith.constant 2.500000e-01 : f32
    %75 = vector.broadcast %cst_43 : f32 to vector<5x5xf32>
    %76 = arith.mulf %74, %75 : vector<5x5xf32>
    %cst_44 = arith.constant dense<0xFF800000> : vector<5xf32>
    %77 = vector.multi_reduction <maximumf>, %76, %cst_44 [1] : vector<5x5xf32> to vector<5xf32>
    %78 = vector.shape_cast %77 : vector<5xf32> to vector<5x1xf32>
    %79 = vector.broadcast %78 : vector<5x1xf32> to vector<5x5xf32>
    %80 = arith.subf %76, %79 : vector<5x5xf32>
    %81 = math.exp %80 : vector<5x5xf32>
    %cst_45 = arith.constant dense<0.000000e+00> : vector<5xf32>
    %82 = vector.multi_reduction <add>, %81, %cst_45 [1] : vector<5x5xf32> to vector<5xf32>
    %83 = vector.shape_cast %82 : vector<5xf32> to vector<5x1xf32>
    %84 = tpu.reciprocal %83 {approx = true} : vector<5x1xf32> -> vector<5x1xf32>
    %85 = vector.broadcast %84 : vector<5x1xf32> to vector<5x5xf32>
    %86 = arith.mulf %81, %85 : vector<5x5xf32>
    %cst_46 = arith.constant dense<0.000000e+00> : vector<5x16xf32>
    %87 = tpu.matmul %86, %72, %cst_46 {dimension_numbers = #tpu.dot_dimension_numbers<[1], [0], [0], [1], [0, 0, 1, 1], [], []>} : vector<5x5xf32>, vector<5x16xf32>, vector<5x16xf32> -> vector<5x16xf32>
    %c0_47 = arith.constant 0 : index
    %c16 = arith.constant 16 : index
    %88 = vector.load %arg26[%c0_47, %c16] : memref<5x32xf32, #tpu.memory_space<vmem>>, vector<5x16xf32>
    tpu.vector_store %arg26[%c0_47, %c16], %87 {strides = array<i32>} : memref<5x32xf32, #tpu.memory_space<vmem>>, vector<5x16xf32>,
    %c0_48 = arith.constant 0 : index
    %c0_49 = arith.constant 0 : index
    %89 = vector.load %arg26[%c0_48, %c0_49] : memref<5x32xf32, #tpu.memory_space<vmem>>, vector<5x32xf32>
    %c0_50 = arith.constant 0 : index
    %c0_51 = arith.constant 0 : index
    %c0_52 = arith.constant 0 : index
    %90 = vector.load %arg10[%c0_50, %c0_51, %c0_52] : memref<2x32x32xf32, #tpu.memory_space<vmem>>, vector<1x32x32xf32>
    %91 = vector.shape_cast %90 : vector<1x32x32xf32> to vector<32x32xf32>
    %cst_53 = arith.constant dense<0.000000e+00> : vector<5x32xf32>
    %92 = tpu.matmul %89, %91, %cst_53 {dimension_numbers = #tpu.dot_dimension_numbers<[1], [0], [0], [1], [0, 0, 1, 1], [], []>} : vector<5x32xf32>, vector<32x32xf32>, vector<5x32xf32> -> vector<5x32xf32>
    %c0_54 = arith.constant 0 : index
    %c0_55 = arith.constant 0 : index
    %c0_56 = arith.constant 0 : index
    %93 = vector.load %arg11[%c0_54, %c0_55, %c0_56] : memref<2x1x32xf32, #tpu.memory_space<vmem>>, vector<1x1x32xf32>
    %94 = vector.shape_cast %93 : vector<1x1x32xf32> to vector<1x32xf32>
    %95 = vector.broadcast %94 : vector<1x32xf32> to vector<5x32xf32>
    %96 = arith.addf %92, %95 : vector<5x32xf32>
    %97 = arith.addf %14, %96 : vector<5x32xf32>
    %c0_57 = arith.constant 0 : index
    %c0_58 = arith.constant 0 : index
    %c0_59 = arith.constant 0 : index
    %98 = vector.load %arg12[%c0_57, %c0_58, %c0_59] : memref<2x1x32xf32, #tpu.memory_space<vmem>>, vector<1x1x32xf32>
    %99 = vector.shape_cast %98 : vector<1x1x32xf32> to vector<1x32xf32>
    %c0_60 = arith.constant 0 : index
    %c0_61 = arith.constant 0 : index
    %c0_62 = arith.constant 0 : index
    %100 = vector.load %arg13[%c0_60, %c0_61, %c0_62] : memref<2x1x32xf32, #tpu.memory_space<vmem>>, vector<1x1x32xf32>
    %101 = vector.shape_cast %100 : vector<1x1x32xf32> to vector<1x32xf32>
    %cst_63 = arith.constant dense<0.000000e+00> : vector<5xf32>
    %102 = vector.multi_reduction <add>, %97, %cst_63 [1] : vector<5x32xf32> to vector<5xf32>
    %103 = vector.shape_cast %102 : vector<5xf32> to vector<5x1xf32>
    %cst_64 = arith.constant 3.200000e+01 : f32
    %104 = vector.broadcast %cst_64 : f32 to vector<5x1xf32>
    %105 = arith.divf %103, %104 : vector<5x1xf32>
    %106 = vector.broadcast %105 : vector<5x1xf32> to vector<5x32xf32>
    %107 = arith.subf %97, %106 : vector<5x32xf32>
    %108 = arith.mulf %107, %107 : vector<5x32xf32>
    %cst_65 = arith.constant dense<0.000000e+00> : vector<5xf32>
    %109 = vector.multi_reduction <add>, %108, %cst_65 [1] : vector<5x32xf32> to vector<5xf32>
    %110 = vector.shape_cast %109 : vector<5xf32> to vector<5x1xf32>
    %cst_66 = arith.constant 3.200000e+01 : f32
    %111 = vector.broadcast %cst_66 : f32 to vector<5x1xf32>
    %112 = arith.divf %110, %111 : vector<5x1xf32>
    %113 = vector.broadcast %105 : vector<5x1xf32> to vector<5x32xf32>
    %114 = arith.subf %97, %113 : vector<5x32xf32>
    %cst_67 = arith.constant 9.99999996E-13 : f32
    %115 = vector.broadcast %cst_67 : f32 to vector<5x1xf32>
    %116 = arith.addf %112, %115 : vector<5x1xf32>
    %117 = math.rsqrt %116 : vector<5x1xf32>
    %118 = vector.broadcast %117 : vector<5x1xf32> to vector<5x32xf32>
    %119 = arith.mulf %114, %118 : vector<5x32xf32>
    %120 = vector.broadcast %99 : vector<1x32xf32> to vector<5x32xf32>
    %121 = arith.mulf %119, %120 : vector<5x32xf32>
    %122 = vector.broadcast %101 : vector<1x32xf32> to vector<5x32xf32>
    %123 = arith.addf %121, %122 : vector<5x32xf32>
    %c0_68 = arith.constant 0 : index
    %c0_69 = arith.constant 0 : index
    %c0_70 = arith.constant 0 : index
    %124 = vector.load %arg14[%c0_68, %c0_69, %c0_70] : memref<2x32x64xf32, #tpu.memory_space<vmem>>, vector<1x32x64xf32>
    %125 = vector.shape_cast %124 : vector<1x32x64xf32> to vector<32x64xf32>
    %cst_71 = arith.constant dense<0.000000e+00> : vector<5x64xf32>
    %126 = tpu.matmul %123, %125, %cst_71 {dimension_numbers = #tpu.dot_dimension_numbers<[1], [0], [0], [1], [0, 0, 1, 1], [], []>} : vector<5x32xf32>, vector<32x64xf32>, vector<5x64xf32> -> vector<5x64xf32>
    %c0_72 = arith.constant 0 : index
    %c0_73 = arith.constant 0 : index
    %c0_74 = arith.constant 0 : index
    %127 = vector.load %arg15[%c0_72, %c0_73, %c0_74] : memref<2x1x64xf32, #tpu.memory_space<vmem>>, vector<1x1x64xf32>
    %128 = vector.shape_cast %127 : vector<1x1x64xf32> to vector<1x64xf32>
    %129 = vector.broadcast %128 : vector<1x64xf32> to vector<5x64xf32>
    %130 = arith.addf %126, %129 : vector<5x64xf32>
    %cst_75 = arith.constant 5.000000e-01 : f32
    %131 = vector.broadcast %cst_75 : f32 to vector<5x64xf32>
    %132 = arith.mulf %131, %130 : vector<5x64xf32>
    %cst_76 = arith.constant 4.471500e-02 : f32
    %133 = vector.broadcast %cst_76 : f32 to vector<5x64xf32>
    %134 = arith.mulf %133, %130 : vector<5x64xf32>
    %135 = arith.mulf %134, %130 : vector<5x64xf32>
    %136 = arith.mulf %135, %130 : vector<5x64xf32>
    %137 = arith.addf %130, %136 : vector<5x64xf32>
    %cst_77 = arith.constant 0.797884583 : f32
    %138 = vector.broadcast %cst_77 : f32 to vector<5x64xf32>
    %139 = arith.mulf %138, %137 : vector<5x64xf32>
    %140 = math.tanh %139 : vector<5x64xf32>
    %cst_78 = arith.constant 1.000000e+00 : f32
    %141 = vector.broadcast %cst_78 : f32 to vector<5x64xf32>
    %142 = arith.addf %141, %140 : vector<5x64xf32>
    %143 = arith.mulf %132, %142 : vector<5x64xf32>
    %c0_79 = arith.constant 0 : index
    %c0_80 = arith.constant 0 : index
    %c0_81 = arith.constant 0 : index
    %144 = vector.load %arg16[%c0_79, %c0_80, %c0_81] : memref<2x64x32xf32, #tpu.memory_space<vmem>>, vector<1x64x32xf32>
    %145 = vector.shape_cast %144 : vector<1x64x32xf32> to vector<64x32xf32>
    %cst_82 = arith.constant dense<0.000000e+00> : vector<5x32xf32>
    %146 = tpu.matmul %143, %145, %cst_82 {dimension_numbers = #tpu.dot_dimension_numbers<[1], [0], [0], [1], [0, 0, 1, 1], [], []>} : vector<5x64xf32>, vector<64x32xf32>, vector<5x32xf32> -> vector<5x32xf32>
    %c0_83 = arith.constant 0 : index
    %c0_84 = arith.constant 0 : index
    %c0_85 = arith.constant 0 : index
    %147 = vector.load %arg17[%c0_83, %c0_84, %c0_85] : memref<2x1x32xf32, #tpu.memory_space<vmem>>, vector<1x1x32xf32>
    %148 = vector.shape_cast %147 : vector<1x1x32xf32> to vector<1x32xf32>
    %149 = vector.broadcast %148 : vector<1x32xf32> to vector<5x32xf32>
    %150 = arith.addf %146, %149 : vector<5x32xf32>
    %151 = arith.addf %97, %150 : vector<5x32xf32>
    %c1_86 = arith.constant 1 : index
    %c0_87 = arith.constant 0 : index
    %c0_88 = arith.constant 0 : index
    %152 = vector.load %arg6[%c1_86, %c0_87, %c0_88] : memref<2x1x32xf32, #tpu.memory_space<vmem>>, vector<1x1x32xf32>
    %153 = vector.shape_cast %152 : vector<1x1x32xf32> to vector<1x32xf32>
    %c1_89 = arith.constant 1 : index
    %c0_90 = arith.constant 0 : index
    %c0_91 = arith.constant 0 : index
    %154 = vector.load %arg7[%c1_89, %c0_90, %c0_91] : memref<2x1x32xf32, #tpu.memory_space<vmem>>, vector<1x1x32xf32>
    %155 = vector.shape_cast %154 : vector<1x1x32xf32> to vector<1x32xf32>
    %cst_92 = arith.constant dense<0.000000e+00> : vector<5xf32>
    %156 = vector.multi_reduction <add>, %151, %cst_92 [1] : vector<5x32xf32> to vector<5xf32>
    %157 = vector.shape_cast %156 : vector<5xf32> to vector<5x1xf32>
    %cst_93 = arith.constant 3.200000e+01 : f32
    %158 = vector.broadcast %cst_93 : f32 to vector<5x1xf32>
    %159 = arith.divf %157, %158 : vector<5x1xf32>
    %160 = vector.broadcast %159 : vector<5x1xf32> to vector<5x32xf32>
    %161 = arith.subf %151, %160 : vector<5x32xf32>
    %162 = arith.mulf %161, %161 : vector<5x32xf32>
    %cst_94 = arith.constant dense<0.000000e+00> : vector<5xf32>
    %163 = vector.multi_reduction <add>, %162, %cst_94 [1] : vector<5x32xf32> to vector<5xf32>
    %164 = vector.shape_cast %163 : vector<5xf32> to vector<5x1xf32>
    %cst_95 = arith.constant 3.200000e+01 : f32
    %165 = vector.broadcast %cst_95 : f32 to vector<5x1xf32>
    %166 = arith.divf %164, %165 : vector<5x1xf32>
    %167 = vector.broadcast %159 : vector<5x1xf32> to vector<5x32xf32>
    %168 = arith.subf %151, %167 : vector<5x32xf32>
    %cst_96 = arith.constant 9.99999996E-13 : f32
    %169 = vector.broadcast %cst_96 : f32 to vector<5x1xf32>
    %170 = arith.addf %166, %169 : vector<5x1xf32>
    %171 = math.rsqrt %170 : vector<5x1xf32>
    %172 = vector.broadcast %171 : vector<5x1xf32> to vector<5x32xf32>
    %173 = arith.mulf %168, %172 : vector<5x32xf32>
    %174 = vector.broadcast %153 : vector<1x32xf32> to vector<5x32xf32>
    %175 = arith.mulf %173, %174 : vector<5x32xf32>
    %176 = vector.broadcast %155 : vector<1x32xf32> to vector<5x32xf32>
    %177 = arith.addf %175, %176 : vector<5x32xf32>
    %c1_97 = arith.constant 1 : index
    %c0_98 = arith.constant 0 : index
    %c0_99 = arith.constant 0 : index
    %178 = vector.load %arg8[%c1_97, %c0_98, %c0_99] : memref<2x32x96xf32, #tpu.memory_space<vmem>>, vector<1x32x96xf32>
    %179 = vector.shape_cast %178 : vector<1x32x96xf32> to vector<32x96xf32>
    %cst_100 = arith.constant dense<0.000000e+00> : vector<5x96xf32>
    %180 = tpu.matmul %177, %179, %cst_100 {dimension_numbers = #tpu.dot_dimension_numbers<[1], [0], [0], [1], [0, 0, 1, 1], [], []>} : vector<5x32xf32>, vector<32x96xf32>, vector<5x96xf32> -> vector<5x96xf32>
    %c1_101 = arith.constant 1 : index
    %c0_102 = arith.constant 0 : index
    %c0_103 = arith.constant 0 : index
    %181 = vector.load %arg9[%c1_101, %c0_102, %c0_103] : memref<2x1x96xf32, #tpu.memory_space<vmem>>, vector<1x1x96xf32>
    %182 = vector.shape_cast %181 : vector<1x1x96xf32> to vector<1x96xf32>
    %183 = vector.broadcast %182 : vector<1x96xf32> to vector<5x96xf32>
    %184 = arith.addf %180, %183 : vector<5x96xf32>
    %185 = vector.extract_strided_slice %184 {offsets = [0, 0], sizes = [5, 32], strides = [1, 1]} : vector<5x96xf32> to vector<5x32xf32>
    %186 = vector.extract_strided_slice %184 {offsets = [0, 32], sizes = [5, 32], strides = [1, 1]} : vector<5x96xf32> to vector<5x32xf32>
    %187 = vector.extract_strided_slice %184 {offsets = [0, 64], sizes = [5, 32], strides = [1, 1]} : vector<5x96xf32> to vector<5x32xf32>
    %188 = vector.extract_strided_slice %185 {offsets = [0, 0], sizes = [5, 16], strides = [1, 1]} : vector<5x32xf32> to vector<5x16xf32>
    %189 = vector.extract_strided_slice %186 {offsets = [0, 0], sizes = [5, 16], strides = [1, 1]} : vector<5x32xf32> to vector<5x16xf32>
    %190 = vector.extract_strided_slice %187 {offsets = [0, 0], sizes = [5, 16], strides = [1, 1]} : vector<5x32xf32> to vector<5x16xf32>
    %191 = tpu.transpose %189, [1, 0] : vector<5x16xf32> -> vector<16x5xf32>
    %cst_104 = arith.constant dense<0.000000e+00> : vector<5x5xf32>
    %192 = tpu.matmul %188, %191, %cst_104 {dimension_numbers = #tpu.dot_dimension_numbers<[1], [0], [0], [1], [0, 0, 1, 1], [], []>} : vector<5x16xf32>, vector<16x5xf32>, vector<5x5xf32> -> vector<5x5xf32>
    %cst_105 = arith.constant 2.500000e-01 : f32
    %193 = vector.broadcast %cst_105 : f32 to vector<5x5xf32>
    %194 = arith.mulf %192, %193 : vector<5x5xf32>
    %cst_106 = arith.constant dense<0xFF800000> : vector<5xf32>
    %195 = vector.multi_reduction <maximumf>, %194, %cst_106 [1] : vector<5x5xf32> to vector<5xf32>
    %196 = vector.shape_cast %195 : vector<5xf32> to vector<5x1xf32>
    %197 = vector.broadcast %196 : vector<5x1xf32> to vector<5x5xf32>
    %198 = arith.subf %194, %197 : vector<5x5xf32>
    %199 = math.exp %198 : vector<5x5xf32>
    %cst_107 = arith.constant dense<0.000000e+00> : vector<5xf32>
    %200 = vector.multi_reduction <add>, %199, %cst_107 [1] : vector<5x5xf32> to vector<5xf32>
    %201 = vector.shape_cast %200 : vector<5xf32> to vector<5x1xf32>
    %202 = tpu.reciprocal %201 {approx = true} : vector<5x1xf32> -> vector<5x1xf32>
    %203 = vector.broadcast %202 : vector<5x1xf32> to vector<5x5xf32>
    %204 = arith.mulf %199, %203 : vector<5x5xf32>
    %cst_108 = arith.constant dense<0.000000e+00> : vector<5x16xf32>
    %205 = tpu.matmul %204, %190, %cst_108 {dimension_numbers = #tpu.dot_dimension_numbers<[1], [0], [0], [1], [0, 0, 1, 1], [], []>} : vector<5x5xf32>, vector<5x16xf32>, vector<5x16xf32> -> vector<5x16xf32>
    %c0_109 = arith.constant 0 : index
    %c0_110 = arith.constant 0 : index
    %206 = vector.load %arg26[%c0_109, %c0_110] : memref<5x32xf32, #tpu.memory_space<vmem>>, vector<5x16xf32>
    tpu.vector_store %arg26[%c0_109, %c0_110], %205 {strides = array<i32>} : memref<5x32xf32, #tpu.memory_space<vmem>>, vector<5x16xf32>,
    %207 = vector.extract_strided_slice %185 {offsets = [0, 16], sizes = [5, 16], strides = [1, 1]} : vector<5x32xf32> to vector<5x16xf32>
    %208 = vector.extract_strided_slice %186 {offsets = [0, 16], sizes = [5, 16], strides = [1, 1]} : vector<5x32xf32> to vector<5x16xf32>
    %209 = vector.extract_strided_slice %187 {offsets = [0, 16], sizes = [5, 16], strides = [1, 1]} : vector<5x32xf32> to vector<5x16xf32>
    %210 = tpu.transpose %208, [1, 0] : vector<5x16xf32> -> vector<16x5xf32>
    %cst_111 = arith.constant dense<0.000000e+00> : vector<5x5xf32>
    %211 = tpu.matmul %207, %210, %cst_111 {dimension_numbers = #tpu.dot_dimension_numbers<[1], [0], [0], [1], [0, 0, 1, 1], [], []>} : vector<5x16xf32>, vector<16x5xf32>, vector<5x5xf32> -> vector<5x5xf32>
    %cst_112 = arith.constant 2.500000e-01 : f32
    %212 = vector.broadcast %cst_112 : f32 to vector<5x5xf32>
    %213 = arith.mulf %211, %212 : vector<5x5xf32>
    %cst_113 = arith.constant dense<0xFF800000> : vector<5xf32>
    %214 = vector.multi_reduction <maximumf>, %213, %cst_113 [1] : vector<5x5xf32> to vector<5xf32>
    %215 = vector.shape_cast %214 : vector<5xf32> to vector<5x1xf32>
    %216 = vector.broadcast %215 : vector<5x1xf32> to vector<5x5xf32>
    %217 = arith.subf %213, %216 : vector<5x5xf32>
    %218 = math.exp %217 : vector<5x5xf32>
    %cst_114 = arith.constant dense<0.000000e+00> : vector<5xf32>
    %219 = vector.multi_reduction <add>, %218, %cst_114 [1] : vector<5x5xf32> to vector<5xf32>
    %220 = vector.shape_cast %219 : vector<5xf32> to vector<5x1xf32>
    %221 = tpu.reciprocal %220 {approx = true} : vector<5x1xf32> -> vector<5x1xf32>
    %222 = vector.broadcast %221 : vector<5x1xf32> to vector<5x5xf32>
    %223 = arith.mulf %218, %222 : vector<5x5xf32>
    %cst_115 = arith.constant dense<0.000000e+00> : vector<5x16xf32>
    %224 = tpu.matmul %223, %209, %cst_115 {dimension_numbers = #tpu.dot_dimension_numbers<[1], [0], [0], [1], [0, 0, 1, 1], [], []>} : vector<5x5xf32>, vector<5x16xf32>, vector<5x16xf32> -> vector<5x16xf32>
    %c0_116 = arith.constant 0 : index
    %c16_117 = arith.constant 16 : index
    %225 = vector.load %arg26[%c0_116, %c16_117] : memref<5x32xf32, #tpu.memory_space<vmem>>, vector<5x16xf32>
    tpu.vector_store %arg26[%c0_116, %c16_117], %224 {strides = array<i32>} : memref<5x32xf32, #tpu.memory_space<vmem>>, vector<5x16xf32>,
    %c0_118 = arith.constant 0 : index
    %c0_119 = arith.constant 0 : index
    %226 = vector.load %arg26[%c0_118, %c0_119] : memref<5x32xf32, #tpu.memory_space<vmem>>, vector<5x32xf32>
    %c1_120 = arith.constant 1 : index
    %c0_121 = arith.constant 0 : index
    %c0_122 = arith.constant 0 : index
    %227 = vector.load %arg10[%c1_120, %c0_121, %c0_122] : memref<2x32x32xf32, #tpu.memory_space<vmem>>, vector<1x32x32xf32>
    %228 = vector.shape_cast %227 : vector<1x32x32xf32> to vector<32x32xf32>
    %cst_123 = arith.constant dense<0.000000e+00> : vector<5x32xf32>
    %229 = tpu.matmul %226, %228, %cst_123 {dimension_numbers = #tpu.dot_dimension_numbers<[1], [0], [0], [1], [0, 0, 1, 1], [], []>} : vector<5x32xf32>, vector<32x32xf32>, vector<5x32xf32> -> vector<5x32xf32>
    %c1_124 = arith.constant 1 : index
    %c0_125 = arith.constant 0 : index
    %c0_126 = arith.constant 0 : index
    %230 = vector.load %arg11[%c1_124, %c0_125, %c0_126] : memref<2x1x32xf32, #tpu.memory_space<vmem>>, vector<1x1x32xf32>
    %231 = vector.shape_cast %230 : vector<1x1x32xf32> to vector<1x32xf32>
    %232 = vector.broadcast %231 : vector<1x32xf32> to vector<5x32xf32>
    %233 = arith.addf %229, %232 : vector<5x32xf32>
    %234 = arith.addf %151, %233 : vector<5x32xf32>
    %c1_127 = arith.constant 1 : index
    %c0_128 = arith.constant 0 : index
    %c0_129 = arith.constant 0 : index
    %235 = vector.load %arg12[%c1_127, %c0_128, %c0_129] : memref<2x1x32xf32, #tpu.memory_space<vmem>>, vector<1x1x32xf32>
    %236 = vector.shape_cast %235 : vector<1x1x32xf32> to vector<1x32xf32>
    %c1_130 = arith.constant 1 : index
    %c0_131 = arith.constant 0 : index
    %c0_132 = arith.constant 0 : index
    %237 = vector.load %arg13[%c1_130, %c0_131, %c0_132] : memref<2x1x32xf32, #tpu.memory_space<vmem>>, vector<1x1x32xf32>
    %238 = vector.shape_cast %237 : vector<1x1x32xf32> to vector<1x32xf32>
    %cst_133 = arith.constant dense<0.000000e+00> : vector<5xf32>
    %239 = vector.multi_reduction <add>, %234, %cst_133 [1] : vector<5x32xf32> to vector<5xf32>
    %240 = vector.shape_cast %239 : vector<5xf32> to vector<5x1xf32>
    %cst_134 = arith.constant 3.200000e+01 : f32
    %241 = vector.broadcast %cst_134 : f32 to vector<5x1xf32>
    %242 = arith.divf %240, %241 : vector<5x1xf32>
    %243 = vector.broadcast %242 : vector<5x1xf32> to vector<5x32xf32>
    %244 = arith.subf %234, %243 : vector<5x32xf32>
    %245 = arith.mulf %244, %244 : vector<5x32xf32>
    %cst_135 = arith.constant dense<0.000000e+00> : vector<5xf32>
    %246 = vector.multi_reduction <add>, %245, %cst_135 [1] : vector<5x32xf32> to vector<5xf32>
    %247 = vector.shape_cast %246 : vector<5xf32> to vector<5x1xf32>
    %cst_136 = arith.constant 3.200000e+01 : f32
    %248 = vector.broadcast %cst_136 : f32 to vector<5x1xf32>
    %249 = arith.divf %247, %248 : vector<5x1xf32>
    %250 = vector.broadcast %242 : vector<5x1xf32> to vector<5x32xf32>
    %251 = arith.subf %234, %250 : vector<5x32xf32>
    %cst_137 = arith.constant 9.99999996E-13 : f32
    %252 = vector.broadcast %cst_137 : f32 to vector<5x1xf32>
    %253 = arith.addf %249, %252 : vector<5x1xf32>
    %254 = math.rsqrt %253 : vector<5x1xf32>
    %255 = vector.broadcast %254 : vector<5x1xf32> to vector<5x32xf32>
    %256 = arith.mulf %251, %255 : vector<5x32xf32>
    %257 = vector.broadcast %236 : vector<1x32xf32> to vector<5x32xf32>
    %258 = arith.mulf %256, %257 : vector<5x32xf32>
    %259 = vector.broadcast %238 : vector<1x32xf32> to vector<5x32xf32>
    %260 = arith.addf %258, %259 : vector<5x32xf32>
    %c1_138 = arith.constant 1 : index
    %c0_139 = arith.constant 0 : index
    %c0_140 = arith.constant 0 : index
    %261 = vector.load %arg14[%c1_138, %c0_139, %c0_140] : memref<2x32x64xf32, #tpu.memory_space<vmem>>, vector<1x32x64xf32>
    %262 = vector.shape_cast %261 : vector<1x32x64xf32> to vector<32x64xf32>
    %cst_141 = arith.constant dense<0.000000e+00> : vector<5x64xf32>
    %263 = tpu.matmul %260, %262, %cst_141 {dimension_numbers = #tpu.dot_dimension_numbers<[1], [0], [0], [1], [0, 0, 1, 1], [], []>} : vector<5x32xf32>, vector<32x64xf32>, vector<5x64xf32> -> vector<5x64xf32>
    %c1_142 = arith.constant 1 : index
    %c0_143 = arith.constant 0 : index
    %c0_144 = arith.constant 0 : index
    %264 = vector.load %arg15[%c1_142, %c0_143, %c0_144] : memref<2x1x64xf32, #tpu.memory_space<vmem>>, vector<1x1x64xf32>
    %265 = vector.shape_cast %264 : vector<1x1x64xf32> to vector<1x64xf32>
    %266 = vector.broadcast %265 : vector<1x64xf32> to vector<5x64xf32>
    %267 = arith.addf %263, %266 : vector<5x64xf32>
    %cst_145 = arith.constant 5.000000e-01 : f32
    %268 = vector.broadcast %cst_145 : f32 to vector<5x64xf32>
    %269 = arith.mulf %268, %267 : vector<5x64xf32>
    %cst_146 = arith.constant 4.471500e-02 : f32
    %270 = vector.broadcast %cst_146 : f32 to vector<5x64xf32>
    %271 = arith.mulf %270, %267 : vector<5x64xf32>
    %272 = arith.mulf %271, %267 : vector<5x64xf32>
    %273 = arith.mulf %272, %267 : vector<5x64xf32>
    %274 = arith.addf %267, %273 : vector<5x64xf32>
    %cst_147 = arith.constant 0.797884583 : f32
    %275 = vector.broadcast %cst_147 : f32 to vector<5x64xf32>
    %276 = arith.mulf %275, %274 : vector<5x64xf32>
    %277 = math.tanh %276 : vector<5x64xf32>
    %cst_148 = arith.constant 1.000000e+00 : f32
    %278 = vector.broadcast %cst_148 : f32 to vector<5x64xf32>
    %279 = arith.addf %278, %277 : vector<5x64xf32>
    %280 = arith.mulf %269, %279 : vector<5x64xf32>
    %c1_149 = arith.constant 1 : index
    %c0_150 = arith.constant 0 : index
    %c0_151 = arith.constant 0 : index
    %281 = vector.load %arg16[%c1_149, %c0_150, %c0_151] : memref<2x64x32xf32, #tpu.memory_space<vmem>>, vector<1x64x32xf32>
    %282 = vector.shape_cast %281 : vector<1x64x32xf32> to vector<64x32xf32>
    %cst_152 = arith.constant dense<0.000000e+00> : vector<5x32xf32>
    %283 = tpu.matmul %280, %282, %cst_152 {dimension_numbers = #tpu.dot_dimension_numbers<[1], [0], [0], [1], [0, 0, 1, 1], [], []>} : vector<5x64xf32>, vector<64x32xf32>, vector<5x32xf32> -> vector<5x32xf32>
    %c1_153 = arith.constant 1 : index
    %c0_154 = arith.constant 0 : index
    %c0_155 = arith.constant 0 : index
    %284 = vector.load %arg17[%c1_153, %c0_154, %c0_155] : memref<2x1x32xf32, #tpu.memory_space<vmem>>, vector<1x1x32xf32>
    %285 = vector.shape_cast %284 : vector<1x1x32xf32> to vector<1x32xf32>
    %286 = vector.broadcast %285 : vector<1x32xf32> to vector<5x32xf32>
    %287 = arith.addf %283, %286 : vector<5x32xf32>
    %288 = arith.addf %234, %287 : vector<5x32xf32>
    %289 = vector.extract_strided_slice %288 {offsets = [0, 0], sizes = [1, 32], strides = [1, 1]} : vector<5x32xf32> to vector<1x32xf32>
    %c0_156 = arith.constant 0 : index
    %c0_157 = arith.constant 0 : index
    %290 = vector.load %arg18[%c0_156, %c0_157] : memref<1x32xf32, #tpu.memory_space<vmem>>, vector<1x32xf32>
    %c0_158 = arith.constant 0 : index
    %c0_159 = arith.constant 0 : index
    %291 = vector.load %arg19[%c0_158, %c0_159] : memref<1x32xf32, #tpu.memory_space<vmem>>, vector<1x32xf32>
    %cst_160 = arith.constant dense<0.000000e+00> : vector<1xf32>
    %292 = vector.multi_reduction <add>, %289, %cst_160 [1] : vector<1x32xf32> to vector<1xf32>
    %293 = vector.shape_cast %292 : vector<1xf32> to vector<1x1xf32>
    %cst_161 = arith.constant 3.200000e+01 : f32
    %294 = vector.broadcast %cst_161 : f32 to vector<1x1xf32>
    %295 = arith.divf %293, %294 : vector<1x1xf32>
    %296 = vector.broadcast %295 : vector<1x1xf32> to vector<1x32xf32>
    %297 = arith.subf %289, %296 : vector<1x32xf32>
    %298 = arith.mulf %297, %297 : vector<1x32xf32>
    %cst_162 = arith.constant dense<0.000000e+00> : vector<1xf32>
    %299 = vector.multi_reduction <add>, %298, %cst_162 [1] : vector<1x32xf32> to vector<1xf32>
    %300 = vector.shape_cast %299 : vector<1xf32> to vector<1x1xf32>
    %cst_163 = arith.constant 3.200000e+01 : f32
    %301 = vector.broadcast %cst_163 : f32 to vector<1x1xf32>
    %302 = arith.divf %300, %301 : vector<1x1xf32>
    %303 = vector.broadcast %295 : vector<1x1xf32> to vector<1x32xf32>
    %304 = arith.subf %289, %303 : vector<1x32xf32>
    %cst_164 = arith.constant 9.99999996E-13 : f32
    %305 = vector.broadcast %cst_164 : f32 to vector<1x1xf32>
    %306 = arith.addf %302, %305 : vector<1x1xf32>
    %307 = math.rsqrt %306 : vector<1x1xf32>
    %308 = vector.broadcast %307 : vector<1x1xf32> to vector<1x32xf32>
    %309 = arith.mulf %304, %308 : vector<1x32xf32>
    %310 = arith.mulf %309, %290 : vector<1x32xf32>
    %311 = arith.addf %310, %291 : vector<1x32xf32>
    %c0_165 = arith.constant 0 : index
    %c0_166 = arith.constant 0 : index
    %312 = vector.load %arg20[%c0_165, %c0_166] : memref<32x32xf32, #tpu.memory_space<vmem>>, vector<32x32xf32>
    %cst_167 = arith.constant dense<0.000000e+00> : vector<1x32xf32>
    %313 = tpu.matmul %311, %312, %cst_167 {dimension_numbers = #tpu.dot_dimension_numbers<[1], [0], [0], [1], [0, 0, 1, 1], [], []>} : vector<1x32xf32>, vector<32x32xf32>, vector<1x32xf32> -> vector<1x32xf32>
    %c0_168 = arith.constant 0 : index
    %c0_169 = arith.constant 0 : index
    %314 = vector.load %arg21[%c0_168, %c0_169] : memref<1x32xf32, #tpu.memory_space<vmem>>, vector<1x32xf32>
    %315 = arith.addf %313, %314 : vector<1x32xf32>
    %316 = math.tanh %315 : vector<1x32xf32>
    %c0_170 = arith.constant 0 : index
    %c0_171 = arith.constant 0 : index
    %317 = vector.load %arg22[%c0_170, %c0_171] : memref<32x2xf32, #tpu.memory_space<vmem>>, vector<32x2xf32>
    %cst_172 = arith.constant dense<0.000000e+00> : vector<1x2xf32>
    %318 = tpu.matmul %316, %317, %cst_172 {dimension_numbers = #tpu.dot_dimension_numbers<[1], [0], [0], [1], [0, 0, 1, 1], [], []>} : vector<1x32xf32>, vector<32x2xf32>, vector<1x2xf32> -> vector<1x2xf32>
    %c0_173 = arith.constant 0 : index
    %c0_174 = arith.constant 0 : index
    %319 = vector.load %arg23[%c0_173, %c0_174] : memref<1x2xf32, #tpu.memory_space<vmem>>, vector<1x2xf32>
    %320 = arith.addf %318, %319 : vector<1x2xf32>
    %c0_175 = arith.constant 0 : index
    %c0_176 = arith.constant 0 : index
    %c0_177 = arith.constant 0 : index
    %321 = vector.load %arg24[%c0_175, %c0_176, %c0_177] : memref<1x1x2xf32, #tpu.memory_space<vmem>>, vector<1x1x2xf32>
    %322 = vector.shape_cast %321 : vector<1x1x2xf32> to vector<1x2xf32>
    %323 = vector.shape_cast %320 : vector<1x2xf32> to vector<1x1x2xf32>
    tpu.vector_store %arg24[%c0_175, %c0_176, %c0_177], %323 {strides = array<i32>} : memref<1x1x2xf32, #tpu.memory_space<vmem>>, vector<1x1x2xf32>,
    return
  }
  func.func @transform_0(%arg0: i32) -> (i32, i32, i32) {
    %c0_i32 = arith.constant 0 : i32
    %c0_i32_0 = arith.constant 0 : i32
    %c0_i32_1 = arith.constant 0 : i32
    return %arg0, %c0_i32, %c0_i32_0 : i32, i32, i32
  }
  func.func @transform_1(%arg0: i32) -> (i32, i32) {
    %c0_i32 = arith.constant 0 : i32
    %c0_i32_0 = arith.constant 0 : i32
    %c0_i32_1 = arith.constant 0 : i32
    return %c0_i32, %c0_i32_0 : i32, i32
  }
  func.func @transform_2(%arg0: i32) -> (i32, i32) {
    %c0_i32 = arith.constant 0 : i32
    %c0_i32_0 = arith.constant 0 : i32
    %c0_i32_1 = arith.constant 0 : i32
    return %c0_i32, %c0_i32_0 : i32, i32
  }
  func.func @transform_3(%arg0: i32) -> (i32, i32) {
    %c0_i32 = arith.constant 0 : i32
    %c0_i32_0 = arith.constant 0 : i32
    %c0_i32_1 = arith.constant 0 : i32
    return %c0_i32, %c0_i32_0 : i32, i32
  }
  func.func @transform_4(%arg0: i32) -> (i32, i32) {
    %c0_i32 = arith.constant 0 : i32
    %c0_i32_0 = arith.constant 0 : i32
    %c0_i32_1 = arith.constant 0 : i32
    return %c0_i32, %c0_i32_0 : i32, i32
  }
  func.func @transform_5(%arg0: i32) -> (i32, i32, i32) {
    %c0_i32 = arith.constant 0 : i32
    %c0_i32_0 = arith.constant 0 : i32
    %c0_i32_1 = arith.constant 0 : i32
    %c0_i32_2 = arith.constant 0 : i32
    return %c0_i32, %c0_i32_0, %c0_i32_1 : i32, i32, i32
  }
  func.func @transform_6(%arg0: i32) -> (i32, i32, i32) {
    %c0_i32 = arith.constant 0 : i32
    %c0_i32_0 = arith.constant 0 : i32
    %c0_i32_1 = arith.constant 0 : i32
    %c0_i32_2 = arith.constant 0 : i32
    return %c0_i32, %c0_i32_0, %c0_i32_1 : i32, i32, i32
  }
  func.func @transform_7(%arg0: i32) -> (i32, i32, i32) {
    %c0_i32 = arith.constant 0 : i32
    %c0_i32_0 = arith.constant 0 : i32
    %c0_i32_1 = arith.constant 0 : i32
    %c0_i32_2 = arith.constant 0 : i32
    return %c0_i32, %c0_i32_0, %c0_i32_1 : i32, i32, i32
  }
  func.func @transform_8(%arg0: i32) -> (i32, i32, i32) {
    %c0_i32 = arith.constant 0 : i32
    %c0_i32_0 = arith.constant 0 : i32
    %c0_i32_1 = arith.constant 0 : i32
    %c0_i32_2 = arith.constant 0 : i32
    return %c0_i32, %c0_i32_0, %c0_i32_1 : i32, i32, i32
  }
  func.func @transform_9(%arg0: i32) -> (i32, i32, i32) {
    %c0_i32 = arith.constant 0 : i32
    %c0_i32_0 = arith.constant 0 : i32
    %c0_i32_1 = arith.constant 0 : i32
    %c0_i32_2 = arith.constant 0 : i32
    return %c0_i32, %c0_i32_0, %c0_i32_1 : i32, i32, i32
  }
  func.func @transform_10(%arg0: i32) -> (i32, i32, i32) {
    %c0_i32 = arith.constant 0 : i32
    %c0_i32_0 = arith.constant 0 : i32
    %c0_i32_1 = arith.constant 0 : i32
    %c0_i32_2 = arith.constant 0 : i32
    return %c0_i32, %c0_i32_0, %c0_i32_1 : i32, i32, i32
  }
  func.func @transform_11(%arg0: i32) -> (i32, i32, i32) {
    %c0_i32 = arith.constant 0 : i32
    %c0_i32_0 = arith.constant 0 : i32
    %c0_i32_1 = arith.constant 0 : i32
    %c0_i32_2 = arith.constant 0 : i32
    return %c0_i32, %c0_i32_0, %c0_i32_1 : i32, i32, i32
  }
  func.func @transform_12(%arg0: i32) -> (i32, i32, i32) {
    %c0_i32 = arith.constant 0 : i32
    %c0_i32_0 = arith.constant 0 : i32
    %c0_i32_1 = arith.constant 0 : i32
    %c0_i32_2 = arith.constant 0 : i32
    return %c0_i32, %c0_i32_0, %c0_i32_1 : i32, i32, i32
  }
  func.func @transform_13(%arg0: i32) -> (i32, i32, i32) {
    %c0_i32 = arith.constant 0 : i32
    %c0_i32_0 = arith.constant 0 : i32
    %c0_i32_1 = arith.constant 0 : i32
    %c0_i32_2 = arith.constant 0 : i32
    return %c0_i32, %c0_i32_0, %c0_i32_1 : i32, i32, i32
  }
  func.func @transform_14(%arg0: i32) -> (i32, i32, i32) {
    %c0_i32 = arith.constant 0 : i32
    %c0_i32_0 = arith.constant 0 : i32
    %c0_i32_1 = arith.constant 0 : i32
    %c0_i32_2 = arith.constant 0 : i32
    return %c0_i32, %c0_i32_0, %c0_i32_1 : i32, i32, i32
  }
  func.func @transform_15(%arg0: i32) -> (i32, i32, i32) {
    %c0_i32 = arith.constant 0 : i32
    %c0_i32_0 = arith.constant 0 : i32
    %c0_i32_1 = arith.constant 0 : i32
    %c0_i32_2 = arith.constant 0 : i32
    return %c0_i32, %c0_i32_0, %c0_i32_1 : i32, i32, i32
  }
  func.func @transform_16(%arg0: i32) -> (i32, i32, i32) {
    %c0_i32 = arith.constant 0 : i32
    %c0_i32_0 = arith.constant 0 : i32
    %c0_i32_1 = arith.constant 0 : i32
    %c0_i32_2 = arith.constant 0 : i32
    return %c0_i32, %c0_i32_0, %c0_i32_1 : i32, i32, i32
  }
  func.func @transform_17(%arg0: i32) -> (i32, i32) {
    %c0_i32 = arith.constant 0 : i32
    %c0_i32_0 = arith.constant 0 : i32
    %c0_i32_1 = arith.constant 0 : i32
    return %c0_i32, %c0_i32_0 : i32, i32
  }
  func.func @transform_18(%arg0: i32) -> (i32, i32) {
    %c0_i32 = arith.constant 0 : i32
    %c0_i32_0 = arith.constant 0 : i32
    %c0_i32_1 = arith.constant 0 : i32
    return %c0_i32, %c0_i32_0 : i32, i32
  }
  func.func @transform_19(%arg0: i32) -> (i32, i32) {
    %c0_i32 = arith.constant 0 : i32
    %c0_i32_0 = arith.constant 0 : i32
    %c0_i32_1 = arith.constant 0 : i32
    return %c0_i32, %c0_i32_0 : i32, i32
  }
  func.func @transform_20(%arg0: i32) -> (i32, i32) {
    %c0_i32 = arith.constant 0 : i32
    %c0_i32_0 = arith.constant 0 : i32
    %c0_i32_1 = arith.constant 0 : i32
    return %c0_i32, %c0_i32_0 : i32, i32
  }
  func.func @transform_21(%arg0: i32) -> (i32, i32) {
    %c0_i32 = arith.constant 0 : i32
    %c0_i32_0 = arith.constant 0 : i32
    %c0_i32_1 = arith.constant 0 : i32
    return %c0_i32, %c0_i32_0 : i32, i32
  }
  func.func @transform_22(%arg0: i32) -> (i32, i32) {
    %c0_i32 = arith.constant 0 : i32
    %c0_i32_0 = arith.constant 0 : i32
    %c0_i32_1 = arith.constant 0 : i32
    return %c0_i32, %c0_i32_0 : i32, i32
  }
  func.func @transform_23(%arg0: i32) -> (i32, i32, i32) {
    %c0_i32 = arith.constant 0 : i32
    %c0_i32_0 = arith.constant 0 : i32
    %c0_i32_1 = arith.constant 0 : i32
    return %arg0, %c0_i32, %c0_i32_0 : i32, i32, i32
  }
}

</mosaic_0001>

<bundles_post_ra>
// kernel: vit_binary_classifier_forward.1
= control target key start
LH: loop header
LB: loop body
LE: loop exit
PB: predicated region body
PF: predicated region fallthrough
CT: control target
= control target key end

     0   :  { %s4440_s0 = inlined_call_operand.vmem [shape: f32[2,4,768], index: 0, kind: input, shape index: {}]   ;;  %s4441_s1 = inlined_call_operand.vmem [shape: f32[1,32], index: 1, kind: input, shape index: {}]   ;;  %s4442_s2 = inlined_call_operand.vmem [shape: f32[5,32], index: 2, kind: input, shape index: {}]   ;;  %s4443_s3 = inlined_call_operand.vmem [shape: f32[768,32], index: 3, kind: input, shape index: {}]   ;;  %s4444_s4 = inlined_call_operand.vmem [shape: f32[1,32], index: 4, kind: input, shape index: {}]   ;;  %s4445_s5 = inlined_call_operand.vmem [shape: f32[2,1,32], index: 5, kind: input, shape index: {}]   ;;  %s4446_s6 = inlined_call_operand.vmem [shape: f32[2,1,32], index: 6, kind: input, shape index: {}]   ;;  %s4447_s7 = inlined_call_operand.vmem [shape: f32[2,32,96], index: 7, kind: input, shape index: {}]   ;;  %s4448_s8 = inlined_call_operand.vmem [shape: f32[2,1,96], index: 8, kind: input, shape index: {}]   ;;  %s4449_s9 = inlined_call_operand.vmem [shape: f32[2,32,32], index: 9, kind: input, shape index: {}]   ;;  %s4450_s10 = inlined_call_operand.vmem [shape: f32[2,1,32], index: 10, kind: input, shape index: {}]   ;;  %s4451_s11 = inlined_call_operand.vmem [shape: f32[2,1,32], index: 11, kind: input, shape index: {}]   ;;  %s4452_s12 = inlined_call_operand.vmem [shape: f32[2,1,32], index: 12, kind: input, shape index: {}]   ;;  %s4453_s13 = inlined_call_operand.vmem [shape: f32[2,32,64], index: 13, kind: input, shape index: {}]   ;;  %s4454_s14 = inlined_call_operand.vmem [shape: f32[2,1,64], index: 14, kind: input, shape index: {}]   ;;  %s4455_s15 = inlined_call_operand.vmem [shape: f32[2,64,32], index: 15, kind: input, shape index: {}]   ;;  %s4456_s16 = inlined_call_operand.vmem [shape: f32[2,1,32], index: 16, kind: input, shape index: {}]   ;;  %s4457_s17 = inlined_call_operand.vmem [shape: f32[1,32], index: 17, kind: input, shape index: {}]   ;;  %s4458_s18 = inlined_call_operand.vmem [shape: f32[1,32], index: 18, kind: input, shape index: {}]   ;;  %s4459_s19 = inlined_call_operand.vmem [shape: f32[32,32], index: 19, kind: input, shape index: {}]   ;;  %s4460_s20 = inlined_call_operand.vmem [shape: f32[1,32], index: 20, kind: input, shape index: {}]   ;;  %s4461_s21 = inlined_call_operand.vmem [shape: f32[32,2], index: 21, kind: input, shape index: {}]   ;;  %s4462_s22 = inlined_call_operand.vmem [shape: f32[1,2], index: 22, kind: input, shape index: {}]   ;;  %s4463_s23 = inlined_call_operand.hbm [shape: f32[2,1,2], index: 23, kind: output, shape index: {}]  }
   0x1   :  { %4485 = sst [smem:[#allocation13_spill]] %s4440_s0 }
   0x2   :  { %4486 = sst [smem:[#allocation14_spill]] %s4441_s1 }
   0x3   :  { %4487 = sst [smem:[#allocation15_spill]] %s4442_s2 }
   0x4   :  { %4488 = sst [smem:[#allocation16_spill]] %s4443_s3 }
   0x5   :  { %4489 = sst [smem:[#allocation17_spill]] %s4444_s4 }
   0x6   :  { %4490 = sst [smem:[#allocation18_spill]] %s4445_s5 }
   0x7   :  { %4491 = sst [smem:[#allocation19_spill]] %s4446_s6 }
   0x8   :  { %4492 = sst [smem:[#allocation20_spill]] %s4447_s7 }
   0x9   :  { %4493 = sst [smem:[#allocation21_spill]] %s4462_s22 }
   0xa   :  { %4494 = sst [smem:[#allocation22_spill]] %s4463_s23 }
   0xb   :  { %28 = vsyncpa [#allocation5], 0 }
   0xc   :  { %30 = vsyncpa [#allocation5 + $0x1], 0  ;;  %s3677_s4 = smov 0   ;;  %s3679_s30 = smov 0  }
   0xd   :  { %s3681_s24 = smov 0   ;;  %s3683_s25 = smov 0  }
   0xe LB: > { %4495 = sst [smem:[#allocation7_spill]] %s3533_s4  ;;  %s3698_s5 = sadd.s32 4294967295, %s3545_s25   ;;  %s3545_s25 = sphi %s3683_s25, %s4522_s25   ;;  %s3541_s24 = sphi %s3681_s24, %s4524_s24   ;;  %s3537_s30 = sphi %s3679_s30, %s4526_s30   ;;  %s3533_s4 = sphi %s3677_s4, %s4525_s4  }
   0xf   : > { %4496 = sst [smem:[#allocation8_spill]] %s3541_s24  ;;  %s2807_s1 = sadd.s32 4294967294, %s3545_s25  }
  0x10   : > { %4497 = sst [smem:[#allocation9_spill]] %s3545_s25  ;;  %s3702_s26 = sadd.s32 1, %s3545_s25  }
  0x11   : > { %4498 = sst [smem:[#allocation10_spill]] %s3702_s26  ;;  %s531_s2 = sadd.s32 1, %s3541_s24 }
  0x12   : > { %s528_s6 = ssub.s32 %s3545_s25, %s3702_s26  ;;  %p541_p0 = scmp.ne.s32.totalorder %s3541_s24, %s3537_s30 }
  0x13   : > { %p529_p1 = scmp.eq.s32.totalorder %s528_s6, 0  ;;  %p542_p2 = scmp.eq.s32.totalorder %s3698_s5, 1 }
  0x14   : > { %p547_p3 = scmp.ne.s32.totalorder %s3537_s30, %s3533_s4  ;;  %p548_p4 = scmp.eq.s32.totalorder %s2807_s1, 1 }
  0x15   : > { %s3713_s27 = scalar_select %p529_p1, %s3541_s24, %s531_s2  }
  0x16   : > { %p3715_p5 = por %p542_p2, %p541_p0  ;;  %p3719_p6 = por %p548_p4, %p547_p3 }
  0x17   : > { %4499 = sst [smem:[#allocation11_spill]] %s3713_s27  ;;  %p2810_p7 = scmp.ge.s32.totalorder %s3545_s25, 1 }
  0x18   : > { %s4501_s28 = scalar_select %p3719_p6, 1, 0 }
  0x19   : > { %p640_p8 = scmp.lt.s32.totalorder %s3545_s25, 3 }
  0x1a   : > { %4502 = sst [smem:[#allocation12_spill]] %s4501_s28 }
  0x1b   : > { %p641_p9 = pnand %p2810_p7, %p640_p8 }
  0x1c   : > { %s4503_s0 = sld [smem:[#allocation16_spill]] (!%p641_p9)  ;;  %p703_p10 = scmp.lt.s32.totalorder (!%p641_p9), %s3698_s5, 1  ;;  %vm1036_vm0 = vcmask (!%p641_p9), 253952   ;;  %vm1040_vm1 = vcmask (!%p641_p9), 257024   ;;  %vm1045_vm2 = vcmask (!%p641_p9), 258048   ;;  %vm3548_vm3 = vmmov (!%p641_p9), 0  }
  0x1d   : > { %644 = sbr.rel (%p641_p9) target bundleno = 6614 (0x19d6), region = 112  ;;  %s4504_s29 = sld [smem:[#allocation13_spill]] (!%p641_p9)  ;;  %vm1085_vm4 = vcmask (!%p641_p9), 261120   ;;  %vm1162_vm5 = vcmask (!%p641_p9), 130048   ;;  %vm1256_vm6 = vcmask (!%p641_p9), 1044480   ;;  %vm1238_vm7 = vcmask (!%p641_p9), 36864  }
  0x1e   : > { %s4506_s6 = sld [smem:[#allocation15_spill]] (!%p641_p9)  ;;  %s4508_s22 = sld [smem:[#allocation20_spill]] (!%p641_p9)  ;;  %vm1252_vm8 = vcmask (!%p641_p9), 39936   ;;  %vm1329_vm9 = vcmask (!%p641_p9), 126976   ;;  %vm1502_vm10 = vcmask (!%p641_p9), 258176   ;;  %vm1727_vm11 = vcmask (!%p641_p9), 523264  }
  0x1f   : > { %s4509_s28 = sld [smem:[#allocation18_spill]] (!%p641_p9)  ;;  %s4510_s2 = sld [smem:[#allocation19_spill]] (!%p641_p9)  ;;  %vm2737_vm12 = vcmask (!%p641_p9), 8192  }
  0x20   : > { %s4476_s23 = smov (!%p641_p9), 64   ;;  %s4479_s1 = smov (!%p641_p9), 96  }
  0x21   : > { %s4481_s26 = smov (!%p641_p9), 80   ;;  %s4477_s4 = smov (!%p641_p9), 48  }
  0x22   : > { %v727_v0 = vld [vmem:[%s4503_s0 + $0x80] sm:$0xff] (!%p641_p9)  ;;  %v728_v1 = vld [vmem:[%s4503_s0 + $0x88] sm:$0xff] (!%p641_p9)  ;;  %v729_v11 = vld [vmem:[%s4503_s0 + $0x90] sm:$0xff] (!%p641_p9) }
  0x23   : > { %v711_v2 = vld [vmem:[%s4503_s0] sm:$0xff] (!%p641_p9)  ;;  %v3231_v3 = vpack.c.bf16 (!%p641_p9), %v728_v1, %v727_v0  ;;  %v712_v4 = vld [vmem:[%s4503_s0 + $0x8] sm:$0xff] (!%p641_p9)  ;;  %v730_v13 = vld [vmem:[%s4503_s0 + $0x98] sm:$0xff] (!%p641_p9) }
  0x24   : > { %v759_v5 = vld [vmem:[%s4503_s0 + $0x180] sm:$0xff]  ;;  %v760_v6 = vld [vmem:[%s4503_s0 + $0x188] sm:$0xff]  ;;  %v3233_v7 = vpack.c.bf16 %v712_v4, %v711_v2  ;;  %v713_v14 = vld [vmem:[%s4503_s0 + $0x10] sm:$0xff]  ;;  %v3235_v16 = vpack.c.bf16 %v730_v13, %v729_v11  ;;  %s3819_s24 = scalar_select %p703_p10, %s3698_s5, 1 }
  0x25   : > { %v3263_v8 = vpack.c.bf16 %v760_v6, %v759_v5  ;;  %v743_v9 = vld [vmem:[%s4503_s0 + $0x100] sm:$0xff]  ;;  %v744_v10 = vld [vmem:[%s4503_s0 + $0x108] sm:$0xff]  ;;  %3232 = vmatprep.subr.bf16.mxu0 %v3231_v3  ;;  %v714_v15 = vld [vmem:[%s4503_s0 + $0x18] sm:$0xff] }
  0x26   : > { %v3265_v12 = vpack.c.bf16 %v744_v10, %v743_v9  ;;  %3234 = vmatpush3.bf16.msra.mxu0 %v3233_v7  ;;  %v3237_v17 = vpack.c.bf16 %v714_v15, %v713_v14  ;;  %v761_v18 = vld [vmem:[%s4503_s0 + $0x190] sm:$0xff]  ;;  %v762_v19 = vld [vmem:[%s4503_s0 + $0x198] sm:$0xff]  ;;  %v731_v23 = vld [vmem:[%s4503_s0 + $0xa0] sm:$0xff]  ;;  %s3399_s27 = smul.u32 24, %s3819_s24  ;;  %s4514_s24 = smov 48  }
  0x27   : > { %3264 = vmatprep.subr.bf16.mxu1 %v3263_v8  ;;  %v745_v20 = vld [vmem:[%s4503_s0 + $0x110] sm:$0xff]  ;;  %v3267_v21 = vpack.c.bf16 %v762_v19, %v761_v18  ;;  %v746_v22 = vld [vmem:[%s4503_s0 + $0x118] sm:$0xff]  ;;  %v732_v24 = vld [vmem:[%s4503_s0 + $0xa8] sm:$0xff]  ;;  %3236 = vmatprep.subr.bf16.mxu0 %v3235_v16 }
  0x28   : > { %3266 = vmatpush3.bf16.msra.mxu1 %v3265_v12  ;;  %v3269_v25 = vpack.c.bf16 %v746_v22, %v745_v20  ;;  %v3239_v26 = vpack.c.bf16 %v732_v24, %v731_v23  ;;  %v715_v27 = vld [vmem:[%s4503_s0 + $0x20] sm:$0xff]  ;;  %v716_v28 = vld [vmem:[%s4503_s0 + $0x28] sm:$0xff]  ;;  %v733_v35 = vld [vmem:[%s4503_s0 + $0xb0] sm:$0xff]  ;;  %s3876_s3 = scalar_lea.vmem %s4504_s29, %s3399_s27  ;;  %s4505_s29 = sld [smem:[#allocation14_spill]] }
  0x29   : > { %v763_v29 = vld [vmem:[%s4503_s0 + $0x1a0] sm:$0xff]  ;;  %3268 = vmatprep.subr.bf16.mxu1 %v3267_v21  ;;  %v764_v30 = vld [vmem:[%s4503_s0 + $0x1a8] sm:$0xff]  ;;  %v3241_v33 = vpack.c.bf16 %v716_v28, %v715_v27  ;;  %v734_v36 = vld [vmem:[%s4503_s0 + $0xb8] sm:$0xff]  ;;  %s4480_s27 = smov 16  }
  0x2a   : > { %v747_v31 = vld [vmem:[%s4503_s0 + $0x120] sm:$0xff]  ;;  %v748_v32 = vld [vmem:[%s4503_s0 + $0x128] sm:$0xff]  ;;  %3238 = vmatpush3.bf16.msra.mxu0 %v3237_v17  ;;  %v3271_v34 = vpack.c.bf16 %v764_v30, %v763_v29  ;;  %v717_v37 = vld [vmem:[%s4503_s0 + $0x30] sm:$0xff]  ;;  %v3243_v39 = vpack.c.bf16 %v734_v36, %v733_v35 }
  0x2b   : > { %3240 = vmatprep.subr.bf16.mxu0 %v3239_v26  ;;  %v3273_v38 = vpack.c.bf16 %v748_v32, %v747_v31  ;;  %v718_v40 = vld [vmem:[%s4503_s0 + $0x38] sm:$0xff]  ;;  %v765_v41 = vld [vmem:[%s4503_s0 + $0x1b0] sm:$0xff]  ;;  %v735_v46 = vld [vmem:[%s4503_s0 + $0xc0] sm:$0xff] }
  0x2c   : > { %3270 = vmatpush3.bf16.msra.mxu1 %v3269_v25  ;;  %v766_v42 = vld [vmem:[%s4503_s0 + $0x1b8] sm:$0xff]  ;;  %v749_v44 = vld [vmem:[%s4503_s0 + $0x130] sm:$0xff]  ;;  %v736_v47 = vld [vmem:[%s4503_s0 + $0xc8] sm:$0xff]  ;;  %v3245_v48 = vpack.c.bf16 %v718_v40, %v717_v37 }
  0x2d   : > { %3272 = vmatprep.subr.bf16.mxu1 %v3271_v34  ;;  %v3275_v43 = vpack.c.bf16 %v766_v42, %v765_v41  ;;  %v750_v45 = vld [vmem:[%s4503_s0 + $0x138] sm:$0xff]  ;;  %v767_v49 = vld [vmem:[%s4503_s0 + $0x1c0] sm:$0xff]  ;;  %v768_v50 = vld [vmem:[%s4503_s0 + $0x1c8] sm:$0xff]  ;;  %v3247_v52 = vpack.c.bf16 %v736_v47, %v735_v46 }
  0x2e   : > { %3242 = vmatpush3.bf16.msra.mxu0 %v3241_v33  ;;  %v3277_v51 = vpack.c.bf16 %v750_v45, %v749_v44  ;;  %v719_v53 = vld [vmem:[%s4503_s0 + $0x40] sm:$0xff]  ;;  %v720_v54 = vld [vmem:[%s4503_s0 + $0x48] sm:$0xff]  ;;  %v3279_v56 = vpack.c.bf16 %v768_v50, %v767_v49  ;;  %v737_v58 = vld [vmem:[%s4503_s0 + $0xd0] sm:$0xff] }
  0x2f   : > { %3244 = vmatprep.subr.bf16.mxu0 %v3243_v39  ;;  %v751_v55 = vld [vmem:[%s4503_s0 + $0x140] sm:$0xff]  ;;  %v752_v57 = vld [vmem:[%s4503_s0 + $0x148] sm:$0xff]  ;;  %v738_v59 = vld [vmem:[%s4503_s0 + $0xd8] sm:$0xff]  ;;  %v3249_v62 = vpack.c.bf16 %v720_v54, %v719_v53 }
  0x30   : > { %3274 = vmatpush3.bf16.msra.mxu1 %v3273_v38  ;;  %v769_v60 = vld [vmem:[%s4503_s0 + $0x1d0] sm:$0xff]  ;;  %v770_v61 = vld [vmem:[%s4503_s0 + $0x1d8] sm:$0xff]  ;;  %v3281_v63 = vpack.c.bf16 %v752_v57, %v751_v55  ;;  %v3251_v0 = vpack.c.bf16 %v738_v59, %v737_v58  ;;  %v739_v6 = vld [vmem:[%s4503_s0 + $0xe0] sm:$0xff] }
  0x31   : > { %3276 = vmatprep.subr.bf16.mxu1 %v3275_v43  ;;  %v721_v1 = vld [vmem:[%s4503_s0 + $0x50] sm:$0xff]  ;;  %v722_v2 = vld [vmem:[%s4503_s0 + $0x58] sm:$0xff]  ;;  %v3283_v4 = vpack.c.bf16 %v770_v61, %v769_v60  ;;  %v740_v7 = vld [vmem:[%s4503_s0 + $0xe8] sm:$0xff] }
  0x32   : > { %3246 = vmatpush3.bf16.msra.mxu0 %v3245_v48  ;;  %v753_v3 = vld [vmem:[%s4503_s0 + $0x150] sm:$0xff]  ;;  %v754_v5 = vld [vmem:[%s4503_s0 + $0x158] sm:$0xff]  ;;  %v771_v8 = vld [vmem:[%s4503_s0 + $0x1e0] sm:$0xff]  ;;  %v3253_v10 = vpack.c.bf16 %v722_v2, %v721_v1  ;;  %v3255_v14 = vpack.c.bf16 %v740_v7, %v739_v6 }
  0x33   : > { %3248 = vmatprep.subr.bf16.mxu0 %v3247_v52  ;;  %v772_v9 = vld [vmem:[%s4503_s0 + $0x1e8] sm:$0xff]  ;;  %v723_v11 = vld [vmem:[%s4503_s0 + $0x60] sm:$0xff]  ;;  %v3285_v13 = vpack.c.bf16 %v754_v5, %v753_v3  ;;  %v741_v20 = vld [vmem:[%s4503_s0 + $0xf0] sm:$0xff] }
  0x34   : > { %3278 = vmatpush3.bf16.msra.mxu1 %v3277_v51  ;;  %v708_v12 = vld [vmem:[%s3876_s3] sm:$0xff]  ;;  %v724_v15 = vld [vmem:[%s4503_s0 + $0x68] sm:$0xff]  ;;  %v3287_v19 = vpack.c.bf16 %v772_v9, %v771_v8  ;;  %v742_v21 = vld [vmem:[%s4503_s0 + $0xf8] sm:$0xff] }
  0x35   : > { %3280 = vmatprep.subr.bf16.mxu1 %v3279_v56  ;;  %v755_v16 = vld [vmem:[%s4503_s0 + $0x160] sm:$0xff]  ;;  %v756_v17 = vld [vmem:[%s4503_s0 + $0x168] sm:$0xff]  ;;  %v817_v18 = vcombine.high %v708_v12, %v708_v12  ;;  %v773_v23 = vld [vmem:[%s4503_s0 + $0x1f0] sm:$0xff]  ;;  %v3257_v26 = vpack.c.bf16 %v724_v15, %v723_v11  ;;  %v3259_v28 = vpack.c.bf16 %v742_v21, %v741_v20 }
  0x36   : > { %3250 = vmatpush3.bf16.msra.mxu0 %v3249_v62  ;;  %v709_v22 = vld [vmem:[%s3876_s3 + $0x8] sm:$0xff]  ;;  %v774_v24 = vld [vmem:[%s4503_s0 + $0x1f8] sm:$0xff]  ;;  %v3289_v27 = vpack.c.bf16 %v756_v17, %v755_v16  ;;  %v725_v29 = vld [vmem:[%s4503_s0 + $0x70] sm:$0xff] }
  0x37   : > { %3252 = vmatprep.subr.bf16.mxu0 %v3251_v0  ;;  %887 = vmatprep.mubr.f32.mxu0 %v817_v18  ;;  %v818_v25 = vcombine.high %v709_v22, %v709_v22  ;;  %v726_v30 = vld [vmem:[%s4503_s0 + $0x78] sm:$0xff]  ;;  %v757_v31 = vld [vmem:[%s4503_s0 + $0x170] sm:$0xff]  ;;  %v3291_v32 = vpack.c.bf16 %v774_v24, %v773_v23  ;;  %v791_v34 = vld [vmem:[%s4503_s0 + $0x280] sm:$0xff] }
  0x38   : > { %3282 = vmatpush3.bf16.msra.mxu1 %v3281_v63  ;;  %v758_v33 = vld [vmem:[%s4503_s0 + $0x178] sm:$0xff]  ;;  %v792_v35 = vld [vmem:[%s4503_s0 + $0x288] sm:$0xff]  ;;  %v3261_v36 = vpack.c.bf16 %v726_v30, %v725_v29  ;;  %v775_v39 = vld [vmem:[%s4503_s0 + $0x200] sm:$0xff] }
  0x39   : > { %3284 = vmatprep.subr.bf16.mxu1 %v3283_v4  ;;  %957 = vmatprep.mubr.f32.mxu1 %v818_v25  ;;  %v3293_v37 = vpack.c.bf16 %v758_v33, %v757_v31  ;;  %v3295_v38 = vpack.c.bf16 %v792_v35, %v791_v34  ;;  %v776_v40 = vld [vmem:[%s4503_s0 + $0x208] sm:$0xff]  ;;  %v793_v41 = vld [vmem:[%s4503_s0 + $0x290] sm:$0xff]  ;;  %v794_v42 = vld [vmem:[%s4503_s0 + $0x298] sm:$0xff] }
  0x3a   : > { %3254 = vmatpush3.bf16.msra.mxu0 %v3253_v10  ;;  %v3297_v43 = vpack.c.bf16 %v776_v40, %v775_v39  ;;  %v710_v44 = vld [vmem:[%s3876_s3 + $0x10] sm:$0xff]  ;;  %v3299_v45 = vpack.c.bf16 %v794_v42, %v793_v41  ;;  %v778_v47 = vld [vmem:[%s4503_s0 + $0x218] sm:$0xff]  ;;  %v795_v49 = vld [vmem:[%s4503_s0 + $0x2a0] sm:$0xff]  ;;  %s4507_s3 = sld [smem:[#allocation17_spill]] }
  0x3b   : > { %3256 = vmatprep.subr.bf16.mxu0 %v3255_v14  ;;  %v777_v46 = vld [vmem:[%s4503_s0 + $0x210] sm:$0xff]  ;;  %v819_v48 = vcombine.high %v710_v44, %v710_v44  ;;  %v796_v50 = vld [vmem:[%s4503_s0 + $0x2a8] sm:$0xff]  ;;  %v779_v53 = vld [vmem:[%s4503_s0 + $0x220] sm:$0xff] }
  0x3c   : > { %3286 = vmatpush3.bf16.msra.mxu1 %v3285_v13  ;;  %v3301_v51 = vpack.c.bf16 %v778_v47, %v777_v46  ;;  %v3303_v52 = vpack.c.bf16 %v796_v50, %v795_v49  ;;  %v780_v54 = vld [vmem:[%s4503_s0 + $0x228] sm:$0xff]  ;;  %v797_v55 = vld [vmem:[%s4503_s0 + $0x2b0] sm:$0xff]  ;;  %v798_v56 = vld [vmem:[%s4503_s0 + $0x2b8] sm:$0xff]  ;;  %v3547_v50 = vmov 0.0|0.0  }
  0x3d   : > { %3288 = vmatprep.subr.bf16.mxu1 %v3287_v19  ;;  %v3305_v57 = vpack.c.bf16 %v780_v54, %v779_v53  ;;  %v3307_v58 = vpack.c.bf16 %v798_v56, %v797_v55  ;;  %v781_v59 = vld [vmem:[%s4503_s0 + $0x230] sm:$0xff]  ;;  %v782_v60 = vld [vmem:[%s4503_s0 + $0x238] sm:$0xff]  ;;  %v799_v61 = vld [vmem:[%s4503_s0 + $0x2c0] sm:$0xff]  ;;  %v3549_v54 = vmov 0.0  }
  0x3e   : > { %3258 = vmatpush3.bf16.msra.mxu0 %v3257_v26  ;;  %v800_v62 = vld [vmem:[%s4503_s0 + $0x2c8] sm:$0xff]  ;;  %v3309_v63 = vpack.c.bf16 %v782_v60, %v781_v59  ;;  %v783_v1 = vld [vmem:[%s4503_s0 + $0x240] sm:$0xff]  ;;  %v801_v3 = vld [vmem:[%s4503_s0 + $0x2d0] sm:$0xff] }
  0x3f   : > { %3260 = vmatprep.subr.bf16.mxu0 %v3259_v28  ;;  %v3311_v0 = vpack.c.bf16 %v800_v62, %v799_v61  ;;  %v784_v2 = vld [vmem:[%s4503_s0 + $0x248] sm:$0xff]  ;;  %v802_v4 = vld [vmem:[%s4503_s0 + $0x2d8] sm:$0xff]  ;;  %v785_v7 = vld [vmem:[%s4503_s0 + $0x250] sm:$0xff] }
  0x40   : > { %3290 = vmatpush3.bf16.msra.mxu1 %v3289_v27  ;;  %v3313_v5 = vpack.c.bf16 %v784_v2, %v783_v1  ;;  %v3315_v6 = vpack.c.bf16 %v802_v4, %v801_v3  ;;  %v786_v8 = vld [vmem:[%s4503_s0 + $0x258] sm:$0xff]  ;;  %v803_v9 = vld [vmem:[%s4503_s0 + $0x2e0] sm:$0xff]  ;;  %v804_v10 = vld [vmem:[%s4503_s0 + $0x2e8] sm:$0xff] }
  0x41   : > { %3292 = vmatprep.subr.bf16.mxu1 %v3291_v32  ;;  %v3317_v11 = vpack.c.bf16 %v786_v8, %v785_v7  ;;  %v787_v13 = vld [vmem:[%s4503_s0 + $0x260] sm:$0xff]  ;;  %v788_v14 = vld [vmem:[%s4503_s0 + $0x268] sm:$0xff]  ;;  %v805_v15 = vld [vmem:[%s4503_s0 + $0x2f0] sm:$0xff] }
  0x42   : > { %3262 = vmatpush3.bf16.msra.mxu0 %v3261_v36  ;;  %v806_v16 = vld [vmem:[%s4503_s0 + $0x2f8] sm:$0xff]  ;;  %v3321_v17 = vpack.c.bf16 %v788_v14, %v787_v13  ;;  %v789_v19 = vld [vmem:[%s4503_s0 + $0x270] sm:$0xff]  ;;  %v1034_v23 = vld [vmem:[%s4506_s6] sm:$0x1] }
  0x43   : > { %3296 = vmatprep.subr.bf16.mxu0 %v3295_v38  ;;  %v3323_v18 = vpack.c.bf16 %v806_v16, %v805_v15  ;;  %v790_v20 = vld [vmem:[%s4503_s0 + $0x278] sm:$0xff]  ;;  %v2812_v26 = vld [vmem:[%s4507_s3] ss:$0 sm:$0xff]  ;;  %s4478_s3 = smov 112   ;;  %s4518_s0 = sld [smem:[#allocation22_spill]] }
  0x44   : > { %3294 = vmatpush3.bf16.msra.mxu1 %v3293_v37  ;;  %v3325_v21 = vpack.c.bf16 %v790_v20, %v789_v19  ;;  %v1038_v37 = vld [vmem:[%s4506_s6 + $0x1] sm:$0xf]  ;;  %v2813_v59 = vld [vmem:[%s4509_s28] ss:$0 sm:$0xff] }
  0x45   : > { %888 = vmatmul.mubr.f32.vlgmr.msra.gmra.mrb[0].mxu0 %v708_v12  ;;  %v3319_v12 = vpack.c.bf16 %v804_v10, %v803_v9  ;;  %v1074_v47 = vld [vmem:[%s4508_s22] sm:$0xff]  ;;  %3327 = vmatprep.subr.bf16.mxu1 %v3547_v50 }
  0x46   : > { %3298 = vmatpush3.bf16.msra.mxu0 %v3297_v43  ;;  %1027 = vmatprep.mubr.f32.mxu0 %v819_v48  ;;  %v1075_v48 = vld [vmem:[%s4508_s22 + $0x8] sm:$0xff]  ;;  %v2814_v61 = vld [vmem:[%s4510_s2] ss:$0 sm:$0xff] }
  0x47   : > { %958 = vmatmul.mubr.f32.vlgmr.msra.gmra.mrb[0].mxu1 %v709_v22  ;;  %3300 = vmatprep.subr.bf16.mxu0 %v3299_v45  ;;  %v1033_v22 = vld [vmem:[%s4505_s29] sm:$0x1]  ;;  %v3328_v49 = vpack.c.bf16 %v1075_v48, %v1074_v47  ;;  %s4512_s29 = smov 96  }
  0x48   : > { %v1035_v24 = vadd.f32 %v1034_v23, %v1033_v22  ;;  %3073 = vmatprep.mubr.msk.f32.mxu1 %vm3548_vm3, %v3549_v54 }
  0x49   : > { %3329 = vmatpush3.bf16.msra.mxu1 %v3328_v49 }
  0x4a   : > { %3302 = vmatpush3.bf16.msra.mxu0 %v3301_v51  ;;  %1037 = vst.msk [vmem:[#allocation2] sm:$0x1] %vm1036_vm0, %v1035_v24  ;;  %3330 = vmatprep.subr.bf16.mxu1 %v3547_v50  ;;  %v1076_v51 = vld [vmem:[%s4508_s22 + $0x10] sm:$0xff] }
  0x4b   : > { %3304 = vmatprep.subr.bf16.mxu0 %v3303_v52  ;;  %v1077_v52 = vld [vmem:[%s4508_s22 + $0x18] sm:$0xff] }
  0x4c   : > { %v3331_v53 = vpack.c.bf16 %v1077_v52, %v1076_v51 }
  0x4e   : > { %3306 = vmatpush3.bf16.msra.mxu0 %v3305_v57  ;;  %3332 = vmatpush3.bf16.msra.mxu1 %v3331_v53 }
  0x4f   : > { %3308 = vmatprep.subr.bf16.mxu0 %v3307_v58  ;;  %3076 = vmatprep.subr.mxu1 %v3549_v54 }
  0x52   : > { %3310 = vmatpush3.bf16.msra.mxu0 %v3309_v63 }
  0x53   : > { %3312 = vmatprep.subr.bf16.mxu0 %v3311_v0  ;;  %v2815_v0 = vld [vmem:[%s4448_s8] ss:$0 sm:$0xff] }
  0x56   : > { %3314 = vmatpush3.bf16.msra.mxu0 %v3313_v5 }
  0x57   : > { %3316 = vmatprep.subr.bf16.mxu0 %v3315_v6 }
  0x5a   : > { %3318 = vmatpush3.bf16.msra.mxu0 %v3317_v11 }
  0x5b   : > { %3320 = vmatprep.subr.bf16.mxu0 %v3319_v12 }
  0x5e   : > { %3322 = vmatpush3.bf16.msra.mxu0 %v3321_v17 }
  0x5f   : > { %3324 = vmatprep.subr.bf16.mxu0 %v3323_v18 }
  0x62   : > { %3326 = vmatpush3.bf16.msra.mxu0 %v3325_v21 }
  0x63   : > { %3339 = vmatprep.subr.bf16.mxu0 %v3547_v50 }
  0x65   : > { %1028 = vmatmul.mubr.f32.vlgmr.msra.gmra.mrb[2].mxu0 %v710_v44 }
  0x66   : > { %3115 = vmatprep.mubr.msk.f32.mxu0 %vm3548_vm3, %v3549_v54 }
 0x118   : > { %v2918_v25 = vpop.f32.mrb[0].mxu0 }
 0x119   : > { %v2919_v27 = vpop.f32.mrb[1].mxu0 }
 0x11a   : > { %v2953_v28 = vpop.f32.mrb[0].mxu1  ;;  %v2920_v29 = vadd.f32 %v2919_v27, %v2918_v25 }
 0x11b   : > { %v2954_v30 = vpop.f32.mrb[1].mxu1 }
 0x11c   : > { %v2955_v31 = vadd.f32 %v2954_v30, %v2953_v28  ;;  %v890_v32 = vadd.f32 %v2920_v29, %v2812_v26 }
 0x11e   : > { %v960_v33 = vadd.f32 %v2955_v31, %v890_v32 }
 0x138   : > { %v2988_v34 = vpop.f32.mrb[2].mxu0 }
 0x139   : > { %v2989_v35 = vpop.f32.mrb[3].mxu0 }
 0x13a   : > { %v2990_v36 = vadd.f32 %v2989_v35, %v2988_v34  ;;  %v1505_v35 = vld [vmem:[%s4449_s9] sm:$0xff] }
 0x13c   : > { %v1030_v38 = vadd.f32 %v2990_v36, %v960_v33  ;;  %v1506_v36 = vld [vmem:[%s4449_s9 + $0x8] sm:$0xff] }
 0x13e   : > { %v1039_v39 = vadd.f32 %v1038_v37, %v1030_v38  ;;  %v3334_v37 = vpack.c.bf16 %v1506_v36, %v1505_v35  ;;  %v1507_v38 = vld [vmem:[%s4449_s9 + $0x10] sm:$0xff] }
 0x140   : > { %1041 = vst.msk [vmem:[#allocation2 + $0x1] sm:$0xf] %vm1040_vm1, %v1039_v39  ;;  %v1508_v39 = vld [vmem:[%s4449_s9 + $0x18] sm:$0xff] }
 0x147   : > { %v4041_v40 = vld [vmem:[#allocation2] sm:$0x1f] }
 0x148   : > { %v1046_v41 = vsel %vm1045_vm2, %v4041_v40, 0.0 }
 0x149   : > { %1047 = vadd.xlane.f32.xlu0 %v1046_v41  ;;  %v3337_v41 = vpack.c.bf16 %v1508_v39, %v1507_v38 }
 0x1d6   : > { %v1048_v42 = vpop.xlane.xlu0 %1047 }
 0x1d7   : > { %v1050_v43 = vmul.f32 0.03125, %v1048_v42 }
 0x1d9   : > { %v1051_v44 = vsub.f32 %v4041_v40, %v1050_v43 }
 0x1db   : > { %v1052_v45 = vmul.f32 %v1051_v44, %v1051_v44 }
 0x1dd   : > { %v1053_v46 = vsel %vm1045_vm2, %v1052_v45, 0.0 }
 0x1de   : > { %1054 = vadd.xlane.f32.xlu0 %v1053_v46  ;;  %v2825_v46 = vld [vmem:[%s4450_s10] ss:$0 sm:$0xff] }
 0x26b   : > { %v1055_v55 = vpop.xlane.xlu0 %1054 }
 0x26c   : > { %v1056_v56 = vmul.f32 0.03125, %v1055_v55 }
 0x26e   : > { %v1057_v57 = vadd.f32 1e-12, %v1056_v56 }
 0x270   : > { %3451 = vrsqrt.f32 %v1057_v57 }
 0x27a   : > { %v3452_v58 = vpop.eup %3451 }
 0x27b   : > { %v1059_v60 = vmul.f32 %v3452_v58, %v1051_v44 }
 0x27d   : > { %v1066_v62 = vmul.f32 %v2813_v59, %v1059_v60  ;;  %v1619_v59 = vld [vmem:[%s4453_s13] sm:$0xff] }
 0x27f   : > { %v1073_v63 = vadd.f32 %v2814_v61, %v1066_v62  ;;  %v1621_v61 = vld [vmem:[%s4453_s13 + $0x10] sm:$0xff]  ;;  %v1622_v62 = vld [vmem:[%s4453_s13 + $0x18] sm:$0xff] }
 0x281   : > { %3074 = vmatmul.mubr.msk.f32.vlgmr.msra.gmra.mrb[2].mxu1 %vm1085_vm4, %v1073_v63  ;;  %v3343_v63 = vpack.c.bf16 %v1622_v62, %v1621_v61  ;;  %v2842_v62 = vld [vmem:[%s4448_s8 + $0x1] ss:$0 sm:$0xff] }
 0x282   : > { %3078 = vmatprep.mubr.msk.f32.mxu1 %vm3548_vm3, %v3549_v54 }
 0x354   : > { %v1155_v1 = vpop.f32.mrb[2].mxu1 }
 0x355   : > { %v1156_v2 = vadd.f32 %v2815_v0, %v1155_v1  ;;  %v3075_v3 = vpop.f32.mrb[3].mxu1 }
 0x357   : > { %1250 = vrot.lane.b32.xlu0 %v1156_v2, %s4476_s23  ;;  %1160 = vrot.lane.b32.xlu1 %v1156_v2, %s4479_s1  ;;  %s4515_s23 = smov 64  }
 0x35b   : > { %1333 = vrot.lane.b32.xlu0 %v1156_v2, %s4481_s26  ;;  %s4511_s26 = smov 80  }
 0x3c9   : > { %v1161_v4 = vpop.permute.xlu1 %1160  ;;  %v1251_v5 = vpop.permute.xlu0 %1250 }
 0x3ca   : > { %3077 = vmatpush3.xpose.msk.msra.mxu1 %vm1162_vm5, %v1161_v4  ;;  %v2827_v4 = vld [vmem:[%s4451_s11] ss:$0 sm:$0xff] }
 0x3cb   : > { %3081 = vmatprep.subr.mxu1 %v3549_v54 }
 0x3cd   : > { %3079 = vmatmul.mubr.msk.f32.vlgmr.msra.gmra.mrb[4].mxu1 %vm1162_vm5, %v1156_v2  ;;  %v1334_v15 = vpop.permute.xlu0 %1333 }
 0x3ce   : > { %3082 = vmatpush3.msk.msra.mxu1 %vm1256_vm6, %v1251_v5  ;;  %3083 = vmatprep.mubr.msk.f32.mxu1 %vm3548_vm3, %v3549_v54 }
 0x3cf   : > { %3086 = vmatprep.subr.mxu1 %v3549_v54 }
 0x4a0   : > { %v1233_v6 = vpop.f32.mrb[4].mxu1 }
 0x4a1   : > { %v1237_v7 = vmul.f32 0.25, %v1233_v6  ;;  %v3080_v8 = vpop.f32.mrb[5].mxu1  ;;  %v2828_v6 = vld [vmem:[%s4452_s12] ss:$0 sm:$0xff] }
 0x4a3   : > { %v1239_v9 = vsel %vm1238_vm7, %v1237_v7, -inf }
 0x4a4   : > { %1240 = vmax.xlane.f32.xlu1 %v1239_v9  ;;  %v1712_v9 = vld [vmem:[%s4455_s15] sm:$0xff] }
 0x531   : > { %v1241_v10 = vpop.xlane.xlu1 %1240 }
 0x532   : > { %v1242_v11 = vsub.f32 %v1237_v7, %v1241_v10  ;;  %v1713_v10 = vld [vmem:[%s4455_s15 + $0x8] sm:$0xff] }
 0x534   : > { %v1243_v12 = vmul.f32 1.442695, %v1242_v11  ;;  %v3346_v11 = vpack.c.bf16 %v1713_v10, %v1712_v9 }
 0x536   : > { %3453 = vpow2.f32 %v1243_v12  ;;  %v1714_v12 = vld [vmem:[%s4455_s15 + $0x10] sm:$0xff] }
 0x540   : > { %v3454_v13 = vpop.eup %3453 }
 0x541   : > { %v1245_v14 = vsel %vm1238_vm7, %v3454_v13, 0.0 }
 0x542   : > { %1246 = vadd.xlane.f32.xlu0 %v1245_v14 }
 0x558   : > { %1331 = vrot.lane.b32.xlu0 %v1156_v2, %s4478_s3 }
 0x5cf   : > { %v1247_v16 = vpop.xlane.xlu0 %1246 }
 0x5d0   : > { %3455 = vrcp.f32 %v1247_v16  ;;  %v1717_v16 = vld [vmem:[%s4455_s15 + $0x28] sm:$0xff] }
 0x5d3   : > { %v1332_v19 = vpop.permute.xlu0 %1331 }
 0x5da   : > { %v3456_v17 = vpop.eup %3455 }
 0x5db   : > { %v1249_v18 = vmul.f32 %v3456_v17, %v3454_v13  ;;  %v1715_v13 = vld [vmem:[%s4455_s15 + $0x18] sm:$0xff] }
 0x5dc   : > { %v3349_v14 = vpack.c.bf16 %v1715_v13, %v1714_v12 }
 0x5dd   : > { %3084 = vmatmul.mubr.msk.f32.vlgmr.msra.gmra.mrb[6].mxu1 %vm1252_vm8, %v1249_v18  ;;  %v1718_v18 = vld [vmem:[%s4455_s15 + $0x30] sm:$0xff] }
 0x5de   : > { %3087 = vmatpush3.xpose.msk.msra.mxu1 %vm1162_vm5, %v1334_v15  ;;  %3088 = vmatprep.mubr.msk.f32.mxu1 %vm3548_vm3, %v3549_v54  ;;  %v1716_v15 = vld [vmem:[%s4455_s15 + $0x20] sm:$0xff] }
 0x5df   : > { %3091 = vmatprep.subr.mxu1 %v3549_v54  ;;  %v3352_v17 = vpack.c.bf16 %v1717_v16, %v1716_v15 }
 0x5e1   : > { %3089 = vmatmul.mubr.msk.f32.vlgmr.msra.gmra.mrb[8].mxu1 %vm1162_vm5, %v1332_v19  ;;  %v1719_v19 = vld [vmem:[%s4455_s15 + $0x38] sm:$0xff] }
 0x5e2   : > { %3093 = vmatprep.mubr.msk.f32.mxu1 %vm3548_vm3, %v3549_v54 }
 0x6b0   : > { %v1325_v20 = vpop.f32.mrb[6].mxu1 }
 0x6b1   : > { %1330 = vst.msk [vmem:[#allocation3] sm:$0x1f] %vm1329_vm9, %v1325_v20  ;;  %v3085_v21 = vpop.f32.mrb[7].mxu1  ;;  %v3355_v20 = vpack.c.bf16 %v1719_v19, %v1718_v18 }
 0x6b2   : > { %v2829_v21 = vld [vmem:[%s4454_s14] ss:$0 sm:$0xff] }
 0x6b4   : > { %v1405_v22 = vpop.f32.mrb[8].mxu1 }
 0x6b5   : > { %v1409_v23 = vmul.f32 0.25, %v1405_v22  ;;  %v3090_v24 = vpop.f32.mrb[9].mxu1 }
 0x6b7   : > { %v1410_v25 = vsel %vm1238_vm7, %v1409_v23, -inf }
 0x6b8   : > { %1411 = vmax.xlane.f32.xlu1 %v1410_v25 }
 0x6c9   : > { %1421 = vrot.lane.b32.xlu1 %v1156_v2, %s4477_s4  ;;  %s701_s4 = sand.u32 1, %s3537_s30  }
 0x6ca   : > { %s2740_s25 = scalar_lea.sflag [#allocation5], %s701_s4 }
 0x745   : > { %v1412_v26 = vpop.xlane.xlu1 %1411 }
 0x746   : > { %v1413_v27 = vsub.f32 %v1409_v23, %v1412_v26 }
 0x748   : > { %v1414_v28 = vmul.f32 1.442695, %v1413_v27 }
 0x749   : > { %v1422_v29 = vpop.permute.xlu1 %1421 }
 0x74a   : > { %3457 = vpow2.f32 %v1414_v28  ;;  %3092 = vmatpush3.msk.msra.mxu1 %vm1256_vm6, %v1422_v29 }
 0x74b   : > { %3333 = vmatprep.subr.bf16.mxu1 %v3547_v50 }
 0x754   : > { %v3458_v30 = vpop.eup %3457 }
 0x755   : > { %v1416_v31 = vsel %vm1238_vm7, %v3458_v30, 0.0 }
 0x756   : > { %1417 = vadd.xlane.f32.xlu0 %v1416_v31 }
 0x7e3   : > { %v1418_v32 = vpop.xlane.xlu0 %1417 }
 0x7e4   : > { %3459 = vrcp.f32 %v1418_v32 }
 0x7ee   : > { %v3460_v33 = vpop.eup %3459 }
 0x7ef   : > { %v1420_v34 = vmul.f32 %v3460_v33, %v3458_v30 }
 0x7f1   : > { %3094 = vmatmul.mubr.msk.f32.vlgmr.msra.gmra.mrb[10].mxu1 %vm1252_vm8, %v1420_v34  ;;  %v2831_v34 = vld [vmem:[%s4456_s16] ss:$0 sm:$0xff] }
 0x7f2   : > { %3104 = vmatprep.mubr.msk.f32.mxu1 %vm3548_vm3, %v3549_v54  ;;  %3335 = vmatpush3.bf16.msra.mxu1 %v3334_v37 }
 0x7f3   : > { %3336 = vmatprep.subr.bf16.mxu1 %v3547_v50 }
 0x7f6   : > { %3338 = vmatpush3.bf16.msra.mxu1 %v3337_v41 }
 0x7f7   : > { %3345 = vmatprep.subr.bf16.mxu1 %v3547_v50 }
 0x8c4   : > { %v1494_v42 = vpop.f32.mrb[10].mxu1 }
 0x8c5   : > { %1499 = vrot.lane.b32.xlu1 %v1494_v42, %s4480_s27  ;;  %v3095_v43 = vpop.f32.mrb[11].mxu1  ;;  %s4513_s27 = smov 112  }
 0x937   : > { %v1500_v44 = vpop.permute.xlu1 %1499 }
 0x938   : > { %1503 = vst.msk [vmem:[#allocation3] sm:$0x1f] %vm1502_vm10, %v1500_v44 }
 0x93f   : > { %v1504_v45 = vld [vmem:[#allocation3] sm:$0x1f] }
 0x940   : > { %3105 = vmatmul.mubr.msk.f32.vlgmr.msra.gmra.mrb[12].mxu1 %vm1085_vm4, %v1504_v45 }
 0x941   : > { %3134 = vmatprep.mubr.msk.f32.mxu1 %vm3548_vm3, %v3549_v54  ;;  %3347 = vmatpush3.bf16.msra.mxu1 %v3346_v11 }
 0x942   : > { %3348 = vmatprep.subr.bf16.mxu1 %v3547_v50 }
 0x945   : > { %3350 = vmatpush3.bf16.msra.mxu1 %v3349_v14 }
 0x946   : > { %3351 = vmatprep.subr.bf16.mxu1 %v3547_v50 }
 0x949   : > { %3353 = vmatpush3.bf16.msra.mxu1 %v3352_v17 }
 0x94a   : > { %3354 = vmatprep.subr.bf16.mxu1 %v3547_v50 }
 0x94d   : > { %3356 = vmatpush3.bf16.msra.mxu1 %v3355_v20 }
 0x94e   : > { %3153 = vmatprep.subr.mxu1 %v3549_v54 }
 0xa13   : > { %v1585_v47 = vpop.f32.mrb[12].mxu1 }
 0xa14   : > { %v1586_v48 = vadd.f32 %v2825_v46, %v1585_v47  ;;  %v3106_v49 = vpop.f32.mrb[13].mxu1  ;;  %v2837_v46 = vld [vmem:[%s4508_s22 + $0x20] sm:$0xff]  ;;  %v2838_v47 = vld [vmem:[%s4508_s22 + $0x28] sm:$0xff] }
 0xa15   : > { %v2839_v49 = vld [vmem:[%s4508_s22 + $0x30] sm:$0xff] }
 0xa16   : > { %v4132_v51 = vadd.f32 %v1586_v48, %v4041_v40  ;;  %v1620_v40 = vld [vmem:[%s4453_s13 + $0x8] sm:$0xff]  ;;  %v3358_v48 = vpack.c.bf16 %v2838_v47, %v2837_v46 }
 0xa17   : > { %v3340_v60 = vpack.c.bf16 %v1620_v40, %v1619_v59  ;;  %v2836_v40 = vld [vmem:[%s4510_s2 + $0x1] ss:$0 sm:$0xff] }
 0xa18   : > { %v1592_v52 = vsel %vm1045_vm2, %v4132_v51, 0.0 }
 0xa19   : > { %1593 = vadd.xlane.f32.xlu1 %v1592_v52  ;;  %3341 = vmatpush3.bf16.msra.mxu0 %v3340_v60 }
 0xa1a   : > { %3342 = vmatprep.subr.bf16.mxu0 %v3547_v50 }
 0xa1d   : > { %3344 = vmatpush3.bf16.msra.mxu0 %v3343_v63 }
 0xa1e   : > { %3357 = vmatprep.subr.bf16.mxu0 %v3547_v50 }
 0xaa6   : > { %v1594_v53 = vpop.xlane.xlu1 %1593 }
 0xaa7   : > { %v1595_v55 = vmul.f32 0.03125, %v1594_v53 }
 0xaa9   : > { %v1596_v56 = vsub.f32 %v4132_v51, %v1595_v55 }
 0xaab   : > { %v1597_v57 = vmul.f32 %v1596_v56, %v1596_v56 }
 0xaad   : > { %v1598_v58 = vsel %vm1045_vm2, %v1597_v57, 0.0 }
 0xaae   : > { %1599 = vadd.xlane.f32.xlu0 %v1598_v58  ;;  %v2835_v58 = vld [vmem:[%s4509_s28 + $0x1] ss:$0 sm:$0xff] }
 0xb3b   : > { %v1600_v0 = vpop.xlane.xlu0 %1599 }
 0xb3c   : > { %v1601_v1 = vmul.f32 0.03125, %v1600_v0 }
 0xb3e   : > { %v1602_v2 = vadd.f32 1e-12, %v1601_v1 }
 0xb40   : > { %3461 = vrsqrt.f32 %v1602_v2 }
 0xb4a   : > { %v3462_v3 = vpop.eup %3461 }
 0xb4b   : > { %v1604_v5 = vmul.f32 %v3462_v3, %v1596_v56 }
 0xb4d   : > { %v1611_v7 = vmul.f32 %v2827_v4, %v1604_v5 }
 0xb4f   : > { %v1618_v8 = vadd.f32 %v2828_v6, %v1611_v7 }
 0xb51   : > { %3116 = vmatmul.mubr.msk.f32.vlgmr.msra.gmra.mrb[4].mxu0 %vm1085_vm4, %v1618_v8 }
 0xb52   : > { %3145 = vmatprep.mubr.msk.f32.mxu0 %vm3548_vm3, %v3549_v54  ;;  %3359 = vmatpush3.bf16.msra.mxu0 %v3358_v48 }
 0xb53   : > { %3360 = vmatprep.subr.bf16.mxu0 %v3547_v50 }
 0xc24   : > { %v1699_v22 = vpop.f32.mrb[4].mxu0 }
 0xc25   : > { %v1700_v23 = vadd.f32 %v2829_v21, %v1699_v22  ;;  %v3117_v24 = vpop.f32.mrb[5].mxu0 }
 0xc27   : > { %v1704_v25 = vmul.f32 0.044715, %v1700_v23  ;;  %v1703_v31 = vmul.f32 0.5, %v1700_v23 }
 0xc29   : > { %v1705_v26 = vmul.f32 %v1704_v25, %v1700_v23 }
 0xc2b   : > { %v1706_v27 = vmul.f32 %v1705_v26, %v1700_v23 }
 0xc2d   : > { %v1707_v28 = vadd.f32 %v1706_v27, %v1700_v23 }
 0xc2f   : > { %v1708_v29 = vmul.f32 0.7978846, %v1707_v28 }
 0xc31   : > { %3463 = vtanh.f32 %v1708_v29 }
 0xc3b   : > { %v3464_v30 = vpop.eup %3463 }
 0xc3c   : > { %v1710_v32 = vadd.f32 1.0, %v3464_v30 }
 0xc3e   : > { %v1711_v33 = vmul.f32 %v1710_v32, %v1703_v31  ;;  %v2852_v31 = vld [vmem:[%s4449_s9 + $0x20] sm:$0xff]  ;;  %v2853_v32 = vld [vmem:[%s4449_s9 + $0x28] sm:$0xff] }
 0xc40   : > { %3135 = vmatmul.mubr.msk.f32.vlgmr.msra.gmra.mrb[14].mxu1 %vm1727_vm11, %v1711_v33  ;;  %v3364_v33 = vpack.c.bf16 %v2853_v32, %v2852_v31  ;;  %v2879_v32 = vld [vmem:[%s4456_s16 + $0x1] ss:$0 sm:$0xff] }
 0xc41   : > { %3155 = vmatprep.mubr.msk.f32.mxu1 %vm3548_vm3, %v3549_v54 }
 0xd13   : > { %v1797_v35 = vpop.f32.mrb[14].mxu1 }
 0xd14   : > { %v1798_v36 = vadd.f32 %v2831_v34, %v1797_v35  ;;  %v3136_v37 = vpop.f32.mrb[15].mxu1  ;;  %v2854_v34 = vld [vmem:[%s4449_s9 + $0x30] sm:$0xff]  ;;  %v2855_v35 = vld [vmem:[%s4449_s9 + $0x38] sm:$0xff] }
 0xd16   : > { %v4199_v38 = vadd.f32 %v1798_v36, %v4132_v51  ;;  %v2840_v51 = vld [vmem:[%s4508_s22 + $0x38] sm:$0xff]  ;;  %v3367_v36 = vpack.c.bf16 %v2855_v35, %v2854_v34 }
 0xd17   : > { %v3361_v52 = vpack.c.bf16 %v2840_v51, %v2839_v49 }
 0xd18   : > { %v1806_v39 = vsel %vm1045_vm2, %v4199_v38, 0.0 }
 0xd19   : > { %1807 = vadd.xlane.f32.xlu0 %v1806_v39  ;;  %3362 = vmatpush3.bf16.msra.mxu0 %v3361_v52 }
 0xd1a   : > { %3148 = vmatprep.subr.mxu0 %v3549_v54 }
 0xda6   : > { %v1808_v41 = vpop.xlane.xlu0 %1807 }
 0xda7   : > { %v1809_v42 = vmul.f32 0.03125, %v1808_v41 }
 0xda9   : > { %v1810_v43 = vsub.f32 %v4199_v38, %v1809_v42 }
 0xdab   : > { %v1811_v44 = vmul.f32 %v1810_v43, %v1810_v43 }
 0xdad   : > { %v1812_v45 = vsel %vm1045_vm2, %v1811_v44, 0.0 }
 0xdae   : > { %1813 = vadd.xlane.f32.xlu0 %v1812_v45  ;;  %v2857_v45 = vld [vmem:[%s4450_s10 + $0x1] ss:$0 sm:$0xff] }
 0xe3b   : > { %v1814_v53 = vpop.xlane.xlu0 %1813 }
 0xe3c   : > { %v1815_v55 = vmul.f32 0.03125, %v1814_v53 }
 0xe3e   : > { %v1816_v56 = vadd.f32 1e-12, %v1815_v55 }
 0xe40   : > { %3465 = vrsqrt.f32 %v1816_v56 }
 0xe4a   : > { %v3466_v57 = vpop.eup %3465 }
 0xe4b   : > { %v1818_v59 = vmul.f32 %v3466_v57, %v1810_v43 }
 0xe4d   : > { %v1825_v60 = vmul.f32 %v2835_v58, %v1818_v59  ;;  %v2863_v58 = vld [vmem:[%s4453_s13 + $0x20] sm:$0xff] }
 0xe4f   : > { %v1832_v61 = vadd.f32 %v2836_v40, %v1825_v60  ;;  %v2865_v40 = vld [vmem:[%s4453_s13 + $0x30] sm:$0xff]  ;;  %v2866_v60 = vld [vmem:[%s4453_s13 + $0x38] sm:$0xff] }
 0xe51   : > { %3146 = vmatmul.mubr.msk.f32.vlgmr.msra.gmra.mrb[6].mxu0 %vm1085_vm4, %v1832_v61  ;;  %v3373_v61 = vpack.c.bf16 %v2866_v60, %v2865_v40  ;;  %v2659_v60 = vld [vmem:[%s4461_s21] sm:$0xff] }
 0xe52   : > { %3150 = vmatprep.mubr.msk.f32.mxu0 %vm3548_vm3, %v3549_v54 }
 0xf24   : > { %v1915_v63 = vpop.f32.mrb[6].mxu0 }
 0xf25   : > { %v1916_v0 = vadd.f32 %v2842_v62, %v1915_v63  ;;  %v3147_v1 = vpop.f32.mrb[7].mxu0 }
 0xf27   : > { %2088 = vrot.lane.b32.xlu1 %v1916_v0, %s4511_s26  ;;  %1920 = vrot.lane.b32.xlu0 %v1916_v0, %s4512_s29  ;;  %s4517_s29 = sld [smem:[#allocation21_spill]] }
 0xf2b   : > { %2086 = vrot.lane.b32.xlu0 %v1916_v0, %s4513_s27  ;;  %s2883_s27 = sshll.u32 %s3698_s5, 4  ;;  %s3556_s5 = smov [#allocation4]  }
 0xf2c   : > { %s4398_s2 = scalar_lea.hbm %s4518_s0, %s2883_s27 }
 0xf99   : > { %v1921_v2 = vpop.permute.xlu0 %1920  ;;  %v2089_v3 = vpop.permute.xlu1 %2088 }
 0xf9a   : > { %3149 = vmatpush3.xpose.msk.msra.mxu0 %vm1162_vm5, %v1921_v2  ;;  %v2861_v2 = vld [vmem:[%s4451_s11 + $0x1] ss:$0 sm:$0xff] }
 0xf9b   : > { %3158 = vmatprep.subr.mxu0 %v3549_v54 }
 0xf9d   : > { %3151 = vmatmul.mubr.msk.f32.vlgmr.msra.gmra.mrb[8].mxu0 %vm1162_vm5, %v1916_v0  ;;  %v2087_v4 = vpop.permute.xlu0 %2086 }
 0xf9e   : > { %3159 = vmatpush3.xpose.msk.msra.mxu0 %vm1162_vm5, %v2089_v3  ;;  %3160 = vmatprep.mubr.msk.f32.mxu0 %vm3548_vm3, %v3549_v54 }
 0xf9f   : > { %3363 = vmatprep.subr.bf16.mxu0 %v3547_v50 }
 0xfa1   : > { %3161 = vmatmul.mubr.msk.f32.vlgmr.msra.gmra.mrb[10].mxu0 %vm1162_vm5, %v2087_v4  ;;  %v2862_v4 = vld [vmem:[%s4452_s12 + $0x1] ss:$0 sm:$0xff] }
 0xfa2   : > { %3176 = vmatprep.mubr.msk.f32.mxu0 %vm3548_vm3, %v3549_v54  ;;  %3365 = vmatpush3.bf16.msra.mxu0 %v3364_v33 }
 0xfa3   : > { %3366 = vmatprep.subr.bf16.mxu0 %v3547_v50 }
 0xfa6   : > { %3368 = vmatpush3.bf16.msra.mxu0 %v3367_v36 }
 0xfa7   : > { %3375 = vmatprep.subr.bf16.mxu0 %v3547_v50 }
0x1070   : > { %v1992_v5 = vpop.f32.mrb[8].mxu0 }
0x1071   : > { %v1996_v6 = vmul.f32 0.25, %v1992_v5  ;;  %v3152_v7 = vpop.f32.mrb[9].mxu0 }
0x1072   : > { %v2870_v7 = vld [vmem:[%s4455_s15 + $0x40] sm:$0xff] }
0x1073   : > { %v1997_v8 = vsel %vm1238_vm7, %v1996_v6, -inf }
0x1074   : > { %1998 = vmax.xlane.f32.xlu0 %v1997_v8  ;;  %v2160_v9 = vpop.f32.mrb[10].mxu0  ;;  %v2871_v8 = vld [vmem:[%s4455_s15 + $0x48] sm:$0xff] }
0x1075   : > { %v2164_v10 = vmul.f32 0.25, %v2160_v9  ;;  %v3162_v11 = vpop.f32.mrb[11].mxu0  ;;  %v3376_v9 = vpack.c.bf16 %v2871_v8, %v2870_v7 }
0x1076   : > { %v2873_v11 = vld [vmem:[%s4455_s15 + $0x58] sm:$0xff] }
0x1077   : > { %v2165_v12 = vsel %vm1238_vm7, %v2164_v10, -inf }
0x1078   : > { %2166 = vmax.xlane.f32.xlu1 %v2165_v12 }
0x1089   : > { %2176 = vrot.lane.b32.xlu1 %v1916_v0, %s4514_s24  ;;  %s702_s24 = scalar_lea.vmem [#allocation4], %s701_s4 }
0x1101   : > { %v1999_v13 = vpop.xlane.xlu0 %1998 }
0x1102   : > { %v2000_v14 = vsub.f32 %v1996_v6, %v1999_v13  ;;  %v2874_v13 = vld [vmem:[%s4455_s15 + $0x60] sm:$0xff] }
0x1104   : > { %v2001_v15 = vmul.f32 1.442695, %v2000_v14  ;;  %v2875_v14 = vld [vmem:[%s4455_s15 + $0x68] sm:$0xff] }
0x1105   : > { %v2167_v16 = vpop.xlane.xlu1 %2166 }
0x1106   : > { %3467 = vpow2.f32 %v2001_v15  ;;  %v2168_v17 = vsub.f32 %v2164_v10, %v2167_v16  ;;  %v2872_v10 = vld [vmem:[%s4455_s15 + $0x50] sm:$0xff]  ;;  %v3382_v15 = vpack.c.bf16 %v2875_v14, %v2874_v13 }
0x1107   : > { %v3379_v12 = vpack.c.bf16 %v2873_v11, %v2872_v10  ;;  %v2876_v16 = vld [vmem:[%s4455_s15 + $0x70] sm:$0xff] }
0x1108   : > { %v2169_v18 = vmul.f32 1.442695, %v2168_v17  ;;  %v2877_v17 = vld [vmem:[%s4455_s15 + $0x78] sm:$0xff] }
0x1109   : > { %v2177_v28 = vpop.permute.xlu1 %2176 }
0x110a   : > { %3469 = vpow2.f32 %v2169_v18  ;;  %v3385_v18 = vpack.c.bf16 %v2877_v17, %v2876_v16 }
0x1110   : > { %v3468_v19 = vpop.eup %3467 }
0x1111   : > { %v2003_v20 = vsel %vm1238_vm7, %v3468_v19, 0.0 }
0x1112   : > { %2004 = vadd.xlane.f32.xlu0 %v2003_v20 }
0x1114   : > { %v3470_v21 = vpop.eup %3469 }
0x1115   : > { %v2171_v22 = vsel %vm1238_vm7, %v3470_v21, 0.0 }
0x1116   : > { %2172 = vadd.xlane.f32.xlu0 %v2171_v22 }
0x112c   : > { %2008 = vrot.lane.b32.xlu0 %v1916_v0, %s4515_s23  ;;  %s4516_s23 = smov 16  }
0x119f   : > { %v2005_v23 = vpop.xlane.xlu0 %2004 }
0x11a0   : > { %3471 = vrcp.f32 %v2005_v23 }
0x11a3   : > { %v2173_v24 = vpop.xlane.xlu0 %2172 }
0x11a4   : > { %3473 = vrcp.f32 %v2173_v24 }
0x11a7   : > { %v2009_v25 = vpop.permute.xlu0 %2008 }
0x11a8   : > { %3154 = vmatpush3.msk.msra.mxu1 %vm1256_vm6, %v2009_v25 }
0x11a9   : > { %3163 = vmatprep.subr.mxu1 %v3549_v54 }
0x11aa   : > { %v3472_v26 = vpop.eup %3471 }
0x11ab   : > { %v2007_v27 = vmul.f32 %v3472_v26, %v3468_v19  ;;  %v2868_v19 = vld [vmem:[%s4454_s14 + $0x1] ss:$0 sm:$0xff] }
0x11ad   : > { %3156 = vmatmul.mubr.msk.f32.vlgmr.msra.gmra.mrb[16].mxu1 %vm1252_vm8, %v2007_v27 }
0x11ae   : > { %v3474_v29 = vpop.eup %3473  ;;  %3164 = vmatpush3.msk.msra.mxu1 %vm1256_vm6, %v2177_v28  ;;  %3165 = vmatprep.mubr.msk.f32.mxu1 %vm3548_vm3, %v3549_v54 }
0x11af   : > { %v2175_v30 = vmul.f32 %v3474_v29, %v3470_v21  ;;  %3369 = vmatprep.subr.bf16.mxu1 %v3547_v50 }
0x11b1   : > { %3166 = vmatmul.mubr.msk.f32.vlgmr.msra.gmra.mrb[18].mxu1 %vm1252_vm8, %v2175_v30 }
0x11b2   : > { %3187 = vmatprep.mubr.msk.f32.mxu1 %vm3548_vm3, %v3549_v54 }
0x1280   : > { %v2081_v37 = vpop.f32.mrb[16].mxu1 }
0x1281   : > { %2085 = vst.msk [vmem:[#allocation3] sm:$0x1f] %vm1329_vm9, %v2081_v37  ;;  %v3157_v39 = vpop.f32.mrb[17].mxu1 }
0x1284   : > { %v2249_v41 = vpop.f32.mrb[18].mxu1 }
0x1285   : > { %2254 = vrot.lane.b32.xlu1 %v2249_v41, %s4516_s23  ;;  %v3167_v42 = vpop.f32.mrb[19].mxu1  ;;  %s2752_s23 = sshll.u32 %s702_s24, 4  ;;  %s4400_s23 = int_to_ptr.vmem [resolvable:$true] %s2752_s23 }
0x1286   : > { %s3483_s26 = scalar_lea.vmem %s4400_s23, 16 }
0x1287   : > { %p3484_p11 = scmp.ne.s32.totalorder %s4400_s23, %s3483_s26 }
0x1289   : > { %p3485_p12 = pnand %p3484_p11, %p3715_p5 }
0x128b   : > { %p3486_p13 = pneg %p3485_p12 }
0x12f7   : > { %v2255_v43 = vpop.permute.xlu1 %2254 }
0x12f8   : > { %2257 = vst.msk [vmem:[#allocation3] sm:$0x1f] %vm1502_vm10, %v2255_v43 }
0x12ff   : > { %v2258_v44 = vld [vmem:[#allocation3] sm:$0x1f] }
0x1300   : > { %3177 = vmatmul.mubr.msk.f32.vlgmr.msra.gmra.mrb[12].mxu0 %vm1085_vm4, %v2258_v44 }
0x1301   : > { %3206 = vmatprep.mubr.msk.f32.mxu0 %vm3548_vm3, %v3549_v54  ;;  %3377 = vmatpush3.bf16.msra.mxu0 %v3376_v9 }
0x1302   : > { %3378 = vmatprep.subr.bf16.mxu0 %v3547_v50 }
0x1305   : > { %3380 = vmatpush3.bf16.msra.mxu0 %v3379_v12 }
0x1306   : > { %3381 = vmatprep.subr.bf16.mxu0 %v3547_v50 }
0x1309   : > { %3383 = vmatpush3.bf16.msra.mxu0 %v3382_v15 }
0x130a   : > { %3384 = vmatprep.subr.bf16.mxu0 %v3547_v50 }
0x130d   : > { %3386 = vmatpush3.bf16.msra.mxu0 %v3385_v18 }
0x13d3   : > { %v2341_v46 = vpop.f32.mrb[12].mxu0 }
0x13d4   : > { %v2342_v47 = vadd.f32 %v2857_v45, %v2341_v46  ;;  %v3178_v48 = vpop.f32.mrb[13].mxu0  ;;  %v2580_v45 = vld [vmem:[%s4459_s19] sm:$0xff]  ;;  %v2581_v46 = vld [vmem:[%s4459_s19 + $0x8] sm:$0xff] }
0x13d5   : > { %v2582_v48 = vld [vmem:[%s4459_s19 + $0x10] sm:$0xff] }
0x13d6   : > { %v4284_v49 = vadd.f32 %v2342_v47, %v4199_v38  ;;  %v2864_v38 = vld [vmem:[%s4453_s13 + $0x28] sm:$0xff]  ;;  %v3388_v47 = vpack.c.bf16 %v2581_v46, %v2580_v45 }
0x13d7   : > { %v3370_v59 = vpack.c.bf16 %v2864_v38, %v2863_v58  ;;  %v2564_v38 = vld [vmem:[%s4458_s18] sm:$0x1] }
0x13d8   : > { %v2350_v51 = vsel %vm1045_vm2, %v4284_v49, 0.0 }
0x13d9   : > { %2351 = vadd.xlane.f32.xlu0 %v2350_v51  ;;  %3371 = vmatpush3.bf16.msra.mxu1 %v3370_v59 }
0x13da   : > { %3372 = vmatprep.subr.bf16.mxu1 %v3547_v50 }
0x13dd   : > { %3374 = vmatpush3.bf16.msra.mxu1 %v3373_v61  ;;  %v2660_v61 = vld [vmem:[%s4461_s21 + $0x8] sm:$0xff] }
0x13de   : > { %3387 = vmatprep.subr.bf16.mxu1 %v3547_v50 }
0x1466   : > { %v2352_v52 = vpop.xlane.xlu0 %2351 }
0x1467   : > { %v2353_v53 = vmul.f32 0.03125, %v2352_v52 }
0x1469   : > { %v2354_v55 = vsub.f32 %v4284_v49, %v2353_v53 }
0x146b   : > { %v2355_v56 = vmul.f32 %v2354_v55, %v2354_v55 }
0x146d   : > { %v2356_v57 = vsel %vm1045_vm2, %v2355_v56, 0.0 }
0x146e   : > { %2357 = vadd.xlane.f32.xlu1 %v2356_v57  ;;  %v2563_v57 = vld [vmem:[%s4457_s17] sm:$0x1] }
0x14fb   : > { %v2358_v62 = vpop.xlane.xlu1 %2357 }
0x14fc   : > { %v2359_v63 = vmul.f32 0.03125, %v2358_v62  ;;  %v2661_v62 = vld [vmem:[%s4461_s21 + $0x10] sm:$0xff] }
0x14fe   : > { %v2360_v0 = vadd.f32 1e-12, %v2359_v63  ;;  %v3394_v63 = vpack.c.bf16 %v2660_v61, %v2659_v60 }
0x1500   : > { %3475 = vrsqrt.f32 %v2360_v0  ;;  %v2662_v0 = vld [vmem:[%s4461_s21 + $0x18] sm:$0xff] }
0x150a   : > { %v3476_v1 = vpop.eup %3475 }
0x150b   : > { %v2362_v3 = vmul.f32 %v3476_v1, %v2354_v55  ;;  %v2584_v1 = vld [vmem:[%s4460_s20] sm:$0x1] }
0x150d   : > { %v2369_v5 = vmul.f32 %v2861_v2, %v2362_v3 }
0x150f   : > { %v2376_v6 = vadd.f32 %v2862_v4, %v2369_v5 }
0x1511   : > { %3188 = vmatmul.mubr.msk.f32.vlgmr.msra.gmra.mrb[20].mxu1 %vm1085_vm4, %v2376_v6  ;;  %v2663_v6 = vld [vmem:[%s4517_s29] sm:$0x1]  ;;  %s3487_s29 = sshll.u32 %s3556_s5, 4  ;;  %s3488_s29 = int_to_ptr.vmem [resolvable:$false] %s3487_s29 }
0x1512   : > { %3217 = vmatprep.mubr.msk.f32.mxu1 %vm3548_vm3, %v3549_v54  ;;  %3389 = vmatpush3.bf16.msra.mxu1 %v3388_v47  ;;  %s3489_s6 = scalar_lea.vmem %s3488_s29, 32  ;;  %p3490_p0 = scmp.lt.s32.totalorder %s4400_s23, %s3488_s29 }
0x1513   : > { %3390 = vmatprep.subr.bf16.mxu1 %v3547_v50  ;;  %p3491_p1 = scmp.lt.s32.totalorder %s3489_s6, %s3483_s26 }
0x1515   : > { %p3492_p2 = por %p3491_p1, %p3490_p0 }
0x1517   : > { %p3493_p3 = pnand %p3492_p2, %p3486_p13 }
0x15e4   : > { %v2459_v20 = vpop.f32.mrb[20].mxu1 }
0x15e5   : > { %v2460_v21 = vadd.f32 %v2868_v19, %v2459_v20  ;;  %v3189_v22 = vpop.f32.mrb[21].mxu1 }
0x15e7   : > { %v2464_v23 = vmul.f32 0.044715, %v2460_v21  ;;  %v2463_v29 = vmul.f32 0.5, %v2460_v21 }
0x15e9   : > { %v2465_v24 = vmul.f32 %v2464_v23, %v2460_v21 }
0x15eb   : > { %v2466_v25 = vmul.f32 %v2465_v24, %v2460_v21 }
0x15ed   : > { %v2467_v26 = vadd.f32 %v2466_v25, %v2460_v21 }
0x15ef   : > { %v2468_v27 = vmul.f32 0.7978846, %v2467_v26 }
0x15f1   : > { %3477 = vtanh.f32 %v2468_v27 }
0x15fb   : > { %v3478_v28 = vpop.eup %3477 }
0x15fc   : > { %v2470_v30 = vadd.f32 1.0, %v3478_v28 }
0x15fe   : > { %v2471_v31 = vmul.f32 %v2470_v30, %v2463_v29 }
0x1600   : > { %3207 = vmatmul.mubr.msk.f32.vlgmr.msra.gmra.mrb[14].mxu0 %vm1727_vm11, %v2471_v31 }
0x16d3   : > { %v2558_v33 = vpop.f32.mrb[14].mxu0 }
0x16d4   : > { %v2559_v34 = vadd.f32 %v2879_v32, %v2558_v33  ;;  %v3208_v35 = vpop.f32.mrb[15].mxu0 }
0x16d6   : > { %v2562_v36 = vadd.f32 %v2559_v34, %v4284_v49  ;;  %v2583_v49 = vld [vmem:[%s4459_s19 + $0x18] sm:$0xff] }
0x16d7   : > { %v3391_v51 = vpack.c.bf16 %v2583_v49, %v2582_v48 }
0x16d8   : > { %v2565_v37 = vsel %vm1036_vm0, %v2562_v36, 0.0 }
0x16d9   : > { %2566 = vadd.xlane.f32.xlu0 %v2565_v37  ;;  %3392 = vmatpush3.bf16.msra.mxu1 %v3391_v51 }
0x16da   : > { %3393 = vmatprep.subr.bf16.mxu1 %v3547_v50 }
0x1766   : > { %v2567_v39 = vpop.xlane.xlu0 %2566 }
0x1767   : > { %v2568_v41 = vmul.f32 0.03125, %v2567_v39 }
0x1769   : > { %v2569_v42 = vsub.f32 %v2562_v36, %v2568_v41 }
0x176b   : > { %v2570_v43 = vmul.f32 %v2569_v42, %v2569_v42 }
0x176d   : > { %v2571_v44 = vsel %vm1036_vm0, %v2570_v43, 0.0 }
0x176e   : > { %2572 = vadd.xlane.f32.xlu0 %v2571_v44 }
0x17fb   : > { %v2573_v52 = vpop.xlane.xlu0 %2572 }
0x17fc   : > { %v2574_v53 = vmul.f32 0.03125, %v2573_v52 }
0x17fe   : > { %v2575_v55 = vadd.f32 1e-12, %v2574_v53 }
0x1800   : > { %3479 = vrsqrt.f32 %v2575_v55 }
0x180a   : > { %v3480_v56 = vpop.eup %3479 }
0x180b   : > { %v2577_v58 = vmul.f32 %v3480_v56, %v2569_v42 }
0x180d   : > { %v2578_v59 = vmul.f32 %v2577_v58, %v2563_v57 }
0x180f   : > { %v2579_v40 = vadd.f32 %v2578_v59, %v2564_v38 }
0x1811   : > { %3218 = vmatmul.mubr.msk.f32.vlgmr.msra.gmra.mrb[22].mxu1 %vm1085_vm4, %v2579_v40 }
0x1812   : > { %3228 = vmatprep.mubr.msk.f32.mxu1 %vm3548_vm3, %v3549_v54  ;;  %3395 = vmatpush3.bf16.msra.mxu1 %v3394_v63  ;;  %v3397_v54 = vpack.c.bf16 %v2662_v0, %v2661_v62 }
0x1813   : > { %3396 = vmatprep.subr.bf16.mxu1 %v3547_v50 }
0x1816   : > { %3398 = vmatpush3.bf16.msra.mxu1 %v3397_v54 }
0x18e4   : > { %v2654_v2 = vpop.f32.mrb[22].mxu1 }
0x18e5   : > { %v2655_v3 = vadd.f32 %v2654_v2, %v2584_v1  ;;  %v3219_v4 = vpop.f32.mrb[23].mxu1 }
0x18e7   : > { %3481 = vtanh.f32 %v2655_v3 }
0x18f1   : > { %v3482_v5 = vpop.eup %3481 }
0x18f2   : > { %3229 = vmatmul.mubr.msk.f32.vlgmr.msra.gmra.mrb[24].mxu1 %vm1085_vm4, %v3482_v5 }
0x19c5   : > { %v2733_v50 = vpop.f32.mrb[24].mxu1 }
0x19c6   : > { %v2734_v7 = vadd.f32 %v2733_v50, %v2663_v6  ;;  %v3230_v8 = vpop.f32.mrb[25].mxu1 }
0x19c8   : > { %2738 = vst.msk [vmem:[%s702_s24] sm:$0x1] %vm2737_vm12, %v2734_v7 }
0x19c9   : > { %3496 = shalt.err (!%p3493_p3)
}
0x19ca   : > { %s3497_s4 = scalar_lea.hbm %s4398_s2, 16  ;;  %s3501_s1 = scalar_lea.hbm %s4518_s0, 32 }
0x19cb   : > { %p3498_p4 = scmp.ne.s32.totalorder %s4398_s2, %s3497_s4  ;;  %p3502_p9 = scmp.lt.u32.totalorder %s4398_s2, %s4518_s0 }
0x19cc   : > { %p3503_p10 = scmp.lt.u32.totalorder %s3501_s1, %s3497_s4  ;;  %p3505_p12 = scmp.lt.u32.totalorder %s3497_s4, %s4398_s2 }
0x19cd   : > { %p3499_p7 = pnand %p3498_p4, %p3715_p5 }
0x19ce   : > { %p3504_p11 = por %p3503_p10, %p3502_p9 }
0x19cf   : > { %p3500_p8 = pneg %p3499_p7 }
0x19d0   : > { %p3506_p13 = por %p3505_p12, %p3504_p11 }
0x19d2   : > { %p3507_p0 = pnand %p3506_p13, %p3500_p8 }
0x19d4   : > { %3510 = shalt.err (!%p3507_p0)
}
0x19d5   : > { %3400 = dma.vmem_to_hbm [thread:$0]  (%p3715_p5), %s4400_s23, 16, %s4398_s2, %s2740_s25  }
0x19d6 PF: > { %s4519_s6 = sld [smem:[#allocation9_spill]]  ;;  %s4520_s26 = sld [smem:[#allocation7_spill]] }
0x19dc   : > { %p3406_p1 = scmp.ge.s32.totalorder %s4519_s6, 2  ;;  %s2764_s27 = sand.u32 1, %s4520_s26  }
0x19dd   : > { %s2765_s24 = scalar_lea.sflag [#allocation5], %s2764_s27 }
0x19de   : > { %p3403_p2 = pnand %p3406_p1, %p3719_p6 }
0x19e0   : > { %3528 = dma.done.wait (!%p3403_p2), %s2765_s24, 16  }
0x19e1   : > { %3530 = vsyncadd (!%p3403_p2), %s2765_s24, 4294967280  ;;  %s4522_s25 = sld [smem:[#allocation10_spill]]  ;;  %s4523_s1 = sld [smem:[#allocation8_spill]] }
0x19e2   : > { %s4524_s24 = sld [smem:[#allocation11_spill]]  ;;  %s4525_s4 = smov %s3537_s30 }
0x19e7   : > { %p33_p3 = scmp.ge.s32.totalorder %s4522_s25, 4   ;;  %s4526_s30 = smov %s4523_s1 }
0x19e9   :  { %35 = sbr.rel (!%p33_p3) target bundleno = 14 (0xe), region = 159 }
0x19f0   :  { %2769 = vsyncpa [#allocation5], 1 }
0x19f1   :  { %2771 = vsyncpa [#allocation5 + $0x1], 1 }

</bundles_post_ra>
